<compile_context>
chip_gen: v7x
topology: tpu7x:2x2x1
jax: 0.10.0
libtpu: 0.0.40
codegen_flags: <defaults>
</compile_context>

<pallas_src>
import functools

import jax
import jax.numpy as jnp
from jax.experimental import pallas as pl
from jax.experimental.pallas import tpu as pltpu


# ----------------------------- Pallas GRU kernel ----------------------------------
def gru_chunk_kernel(emb_ref, wi_ref, wh_ref, bc_ref, bhn_ref,   # inputs
                     out_ref, hid_ref,                            # outputs
                     h_scr, xg_scr,                               # VMEM scratch
                     *, seq_len, chunk, bp, hp, unroll):
    """One grid step = one chunk of `chunk` timesteps.

    emb_ref : (chunk*Bp, E)   bf16  padded, time-major flattened embeddings (this chunk)
    wi_ref  : (E, 3*Hp)       bf16  fused input weights  [W_ir^T | W_iz^T | W_in^T]
    wh_ref  : (Hp, 3*Hp)      bf16  fused hidden weights [W_hr^T | W_hz^T | W_hn^T]
    bc_ref  : (1, 3*Hp)       f32   combined biases [b_ir+b_hr | b_iz+b_hz | b_in]
    bhn_ref : (1, Hp)         f32   b_hn (kept separate: it is scaled by r)
    out_ref : (chunk*Bp, Hp)  f32   h_t for every step in the chunk
    hid_ref : (Bp, Hp)        f32   running final hidden state
    h_scr   : (Bp, Hp)        f32   hidden state carried across chunks
    xg_scr  : (chunk*Bp, 3Hp) f32   per-chunk input-gate pre-activations
    """
    c = pl.program_id(0)

    @pl.when(c == 0)
    def _():
        h_scr[...] = jnp.zeros_like(h_scr)          # PyTorch default h_0 = 0

    # ---- one bf16 MXU GEMM per chunk: input projections for all its timesteps ----
    xg_scr[...] = jnp.dot(emb_ref[...], wi_ref[...],
                          preferred_element_type=jnp.float32)

    wh = wh_ref[...]                                # loop-invariant bf16 (Hp, 3Hp)
    bc_rz = bc_ref[:, :2 * hp]                      # (1, 2Hp)
    bc_n = bc_ref[:, 2 * hp:]                       # (1, Hp)  == b_in
    bhn = bhn_ref[...]                              # (1, Hp)  == b_hn

    # ---- serial recurrence: one bf16 (Bp,Hp) @ (Hp,3Hp) matmul per step ----
    def step(t, h):
        base = pl.multiple_of(t * bp, bp)
        xg = xg_scr[pl.ds(base, bp), :]                                   # (Bp, 3Hp)
        hg = jnp.dot(h.astype(jnp.bfloat16), wh,
                     preferred_element_type=jnp.float32)                   # (Bp, 3Hp)

        rz = jax.nn.sigmoid(xg[:, :2 * hp] + hg[:, :2 * hp] + bc_rz)
        r = rz[:, :hp]
        z = rz[:, hp:]
        n = jnp.tanh(xg[:, 2 * hp:] + bc_n + r * (hg[:, 2 * hp:] + bhn))
        h_new = n + z * (h - n)                                           # == (1-z)*n + z*h

        # Freeze h on padded timesteps past the true sequence length.
        h_new = jnp.where(c * chunk + t < seq_len, h_new, h)

        out_ref[pl.ds(base, bp), :] = h_new                               # output[t] = h_t
        return h_new

    h_final = jax.lax.fori_loop(0, chunk, step, h_scr[...], unroll=unroll)
    h_scr[...] = h_final            # carry to next chunk
    hid_ref[...] = h_final          # last write = final hidden state


# ----------------------------- wrapper (glue) --------------------------------------
@jax.jit
def encoder_forward(src_inputs, params):
    """src_inputs: int32 (T, B) token ids.  Returns (output (T,B,H), hidden (1,B,H))."""
    emb = jnp.take(params["embedding"], src_inputs, axis=0)       # (T, B, E) float32
    T, B, E = emb.shape
    H = params["w_hr"].shape[0]

    Hp = ((H + 127) // 128) * 128      # lane-dense hidden width
    Bp = ((B + 7) // 8) * 8            # sublane-dense batch
    GW = 3 * Hp                        # fused gate width [r | z | n]

    CHUNK = T if T <= 128 else 128     # timesteps per grid step (bounds VMEM on v7x)
    NCHUNK = (T + CHUNK - 1) // CHUNK
    Tp = NCHUNK * CHUNK
    UNROLL = CHUNK if CHUNK <= 16 else 8

    # ---- fused, zero-padded operands (gate order: r, z, n) ----
    def pad_wi(w):   # (H, E) -> (E, Hp)
        return jnp.pad(w.T, ((0, 0), (0, Hp - H)))

    def pad_wh(w):   # (H, H) -> (Hp, Hp)   (padded rows AND cols are zero)
        return jnp.pad(w.T, ((0, Hp - H), (0, Hp - H)))

    def pad_b(b):    # (H,) -> (Hp,)
        return jnp.pad(b, (0, Hp - H))

    wi = jnp.concatenate([pad_wi(params["w_ir"]), pad_wi(params["w_iz"]),
                          pad_wi(params["w_in"])], axis=1).astype(jnp.bfloat16)   # (E, GW)
    wh = jnp.concatenate([pad_wh(params["w_hr"]), pad_wh(params["w_hz"]),
                          pad_wh(params["w_hn"])], axis=1).astype(jnp.bfloat16)   # (Hp, GW)
    # Combined biases added per step: [b_ir+b_hr | b_iz+b_hz | b_in]; b_hn stays separate.
    bc = jnp.concatenate([pad_b(params["b_ir"] + params["b_hr"]),
                          pad_b(params["b_iz"] + params["b_hz"]),
                          pad_b(params["b_in"])]).reshape(1, GW)                  # f32
    bhn = pad_b(params["b_hn"]).reshape(1, Hp)                                    # f32

    # Pad time/batch and flatten time into the sublane dimension; bf16 for the MXU.
    emb_p = jnp.pad(emb, ((0, Tp - T), (0, Bp - B), (0, 0)))
    emb_p = emb_p.reshape(Tp * Bp, E).astype(jnp.bfloat16)                        # (Tp*Bp, E)

    # ---- VMEM budget for compiler_params (resident buffers + double-buffering) ----
    vmem_bytes = (
        2 * (CHUNK * Bp * E * 2)                  # emb chunk (bf16), double-buffered
        + 2 * (E * GW * 2 + Hp * GW * 2)          # weights (bf16)
        + 2 * (GW * 4 + Hp * 4)                   # biases
        + 2 * (CHUNK * Bp * Hp * 4)               # out chunk
        + 2 * (Bp * Hp * 4)                       # hid
        + CHUNK * Bp * GW * 4                     # xg scratch
        + Bp * Hp * 4                             # h scratch
    )
    vmem_limit = max(int(vmem_bytes * 1.5) + (1 << 20), 16 << 20)

    out2d, hid2d = pl.pallas_call(
        functools.partial(gru_chunk_kernel, seq_len=T, chunk=CHUNK, bp=Bp, hp=Hp,
                          unroll=UNROLL),
        out_shape=(jax.ShapeDtypeStruct((Tp * Bp, Hp), jnp.float32),
                   jax.ShapeDtypeStruct((Bp, Hp), jnp.float32)),
        grid_spec=pltpu.PrefetchScalarGridSpec(
            num_scalar_prefetch=0,
            grid=(NCHUNK,),
            in_specs=[
                pl.BlockSpec((CHUNK * Bp, E), lambda c: (c, 0)),   # emb chunk (pipelined)
                pl.BlockSpec((E, GW), lambda c: (0, 0)),           # wi  (resident)
                pl.BlockSpec((Hp, GW), lambda c: (0, 0)),          # wh  (resident)
                pl.BlockSpec((1, GW), lambda c: (0, 0)),           # combined bias
                pl.BlockSpec((1, Hp), lambda c: (0, 0)),           # b_hn
            ],
            out_specs=(
                pl.BlockSpec((CHUNK * Bp, Hp), lambda c: (c, 0)),  # output chunk
                pl.BlockSpec((Bp, Hp), lambda c: (0, 0)),          # final hidden
            ),
            scratch_shapes=[
                pltpu.VMEM((Bp, Hp), jnp.float32),                 # h carried across chunks
                pltpu.VMEM((CHUNK * Bp, GW), jnp.float32),         # per-chunk xg
            ],
        ),
        compiler_params=pltpu.CompilerParams(
            dimension_semantics=("arbitrary",),                    # h carried across chunks
            vmem_limit_bytes=vmem_limit,
        ),
    )(emb_p, wi, wh, bc, bhn)

    output = out2d.reshape(Tp, Bp, Hp)[:T, :B, :H]   # (T, B, H)
    hidden = hid2d[None, :B, :H]                     # (1, B, H)
    return output, hidden


# ----------------------------- pure-JAX reference -----------------------------------
def encoder_reference(src_inputs, params):
    emb = jnp.take(params["embedding"], src_inputs, axis=0)  # (T, B, E)
    B = emb.shape[1]
    H = params["w_hr"].shape[0]

    def step(h, x):
        gr = x @ params["w_ir"].T + params["b_ir"] + h @ params["w_hr"].T + params["b_hr"]
        gz = x @ params["w_iz"].T + params["b_iz"] + h @ params["w_hz"].T + params["b_hz"]
        r = jax.nn.sigmoid(gr)
        z = jax.nn.sigmoid(gz)
        gn = x @ params["w_in"].T + params["b_in"] + r * (h @ params["w_hn"].T + params["b_hn"])
        n = jnp.tanh(gn)
        h_new = (1.0 - z) * n + z * h
        return h_new, h_new

    h0 = jnp.zeros((B, H), jnp.float32)
    h_last, outs = jax.lax.scan(step, h0, emb)
    return outs, h_last[None]


# ----------------------------- deterministic init -----------------------------------
def init_params(key, vocab, emb_dim, hidden):
    ks = jax.random.split(key, 13)
    k = 1.0 / jnp.sqrt(hidden)  # PyTorch GRU init: U(-1/sqrt(H), 1/sqrt(H))
    u = lambda kk, shape: jax.random.uniform(kk, shape, jnp.float32, -k, k)
    return {
        "embedding": jax.random.normal(ks[0], (vocab, emb_dim), jnp.float32),  # nn.Embedding N(0,1)
        "w_ir": u(ks[1], (hidden, emb_dim)),
        "w_iz": u(ks[2], (hidden, emb_dim)),
        "w_in": u(ks[3], (hidden, emb_dim)),
        "w_hr": u(ks[4], (hidden, hidden)),
        "w_hz": u(ks[5], (hidden, hidden)),
        "w_hn": u(ks[6], (hidden, hidden)),
        "b_ir": u(ks[7], (hidden,)),
        "b_iz": u(ks[8], (hidden,)),
        "b_in": u(ks[9], (hidden,)),
        "b_hr": u(ks[10], (hidden,)),
        "b_hz": u(ks[11], (hidden,)),
        "b_hn": u(ks[12], (hidden,)),
    }


if __name__ == "__main__":
    # Small shapes consistent with the module: seq=8, batch=2, vocab=100, emb=32, hidden=32.
    T, B, VOCAB, EMB, HID = 8, 2, 100, 32, 32

    key = jax.random.PRNGKey(0)
    k_tok, k_par = jax.random.split(key)
    src_inputs = jax.random.randint(k_tok, (T, B), 0, VOCAB, dtype=jnp.int32)
    params = init_params(k_par, VOCAB, EMB, HID)

    out, hidden = encoder_forward(src_inputs, params)
    out = jax.block_until_ready(out)
    hidden = jax.block_until_ready(hidden)

    ref_out, ref_hidden = encoder_reference(src_inputs, params)
    assert out.shape == (T, B, HID) and hidden.shape == (1, B, HID)
    # bf16 MXU operands (f32 accumulation) -> loosened tolerance vs the f32 reference.
    assert jnp.allclose(out, ref_out, atol=3e-2, rtol=3e-2)
    assert jnp.allclose(hidden, ref_hidden, atol=3e-2, rtol=3e-2)

    print("KERNEL_OK")
</pallas_src>

<mosaic_0001>
module attributes {stable_mosaic.version = 11 : i64} {
  func.func @gru_chunk_kernel(%arg0: i32, %arg1: memref<64x32xbf16, #tpu.memory_space<vmem>>, %arg2: memref<32x384xbf16, #tpu.memory_space<vmem>>, %arg3: memref<128x384xbf16, #tpu.memory_space<vmem>>, %arg4: memref<1x384xf32, #tpu.memory_space<vmem>>, %arg5: memref<1x128xf32, #tpu.memory_space<vmem>>, %arg6: memref<64x128xf32, #tpu.memory_space<vmem>>, %arg7: memref<8x128xf32, #tpu.memory_space<vmem>>, %arg8: memref<8x128xf32, #tpu.memory_space<vmem>>, %arg9: memref<64x384xf32, #tpu.memory_space<vmem>>) attributes {dimension_semantics = [#tpu.dimension_semantics<arbitrary>], iteration_bounds = array<i64: 1>, scalar_prefetch = 0 : i64, scratch_operands = 2 : i64, tpu.core_type = #tpu.core_type<tc>, window_params = [{transform_indices = @transform_0, window_bounds = array<i64: 64, 32>}, {pipeline_mode = #tpu.pipeline_mode<synchronous>, transform_indices = @transform_1, window_bounds = array<i64: 32, 384>}, {pipeline_mode = #tpu.pipeline_mode<synchronous>, transform_indices = @transform_2, window_bounds = array<i64: 128, 384>}, {pipeline_mode = #tpu.pipeline_mode<synchronous>, transform_indices = @transform_3, window_bounds = array<i64: 1, 384>}, {pipeline_mode = #tpu.pipeline_mode<synchronous>, transform_indices = @transform_4, window_bounds = array<i64: 1, 128>}, {transform_indices = @transform_5, window_bounds = array<i64: 64, 128>}, {pipeline_mode = #tpu.pipeline_mode<synchronous>, transform_indices = @transform_6, window_bounds = array<i64: 8, 128>}]} {
    %c0_i32 = arith.constant 0 : i32
    %0 = arith.cmpi eq, %arg0, %c0_i32 : i32
    %1 = arith.extui %0 : i1 to i32
    %c0_i32_0 = arith.constant 0 : i32
    %2 = arith.cmpi ne, %1, %c0_i32_0 : i32
    scf.if %2 {
      %cst_76 = arith.constant 0.000000e+00 : f32
      %302 = vector.broadcast %cst_76 : f32 to vector<8x128xf32>
      %c0_77 = arith.constant 0 : index
      %c0_78 = arith.constant 0 : index
      %303 = vector.load %arg8[%c0_77, %c0_78] : memref<8x128xf32, #tpu.memory_space<vmem>>, vector<8x128xf32>
      tpu.vector_store %arg8[%c0_77, %c0_78], %302 {strides = array<i32>} : memref<8x128xf32, #tpu.memory_space<vmem>>, vector<8x128xf32>,
    } else {
    }
    %c0 = arith.constant 0 : index
    %c0_1 = arith.constant 0 : index
    %3 = vector.load %arg1[%c0, %c0_1] : memref<64x32xbf16, #tpu.memory_space<vmem>>, vector<64x32xbf16>
    %c0_2 = arith.constant 0 : index
    %c0_3 = arith.constant 0 : index
    %4 = vector.load %arg2[%c0_2, %c0_3] : memref<32x384xbf16, #tpu.memory_space<vmem>>, vector<32x384xbf16>
    %cst = arith.constant dense<0.000000e+00> : vector<64x384xf32>
    %5 = tpu.matmul %3, %4, %cst {dimension_numbers = #tpu.dot_dimension_numbers<[1], [0], [0], [1], [0, 0, 1, 1], [], []>} : vector<64x32xbf16>, vector<32x384xbf16>, vector<64x384xf32> -> vector<64x384xf32>
    %c0_4 = arith.constant 0 : index
    %c0_5 = arith.constant 0 : index
    %6 = vector.load %arg9[%c0_4, %c0_5] : memref<64x384xf32, #tpu.memory_space<vmem>>, vector<64x384xf32>
    tpu.vector_store %arg9[%c0_4, %c0_5], %5 {strides = array<i32>} : memref<64x384xf32, #tpu.memory_space<vmem>>, vector<64x384xf32>,
    %c0_6 = arith.constant 0 : index
    %c0_7 = arith.constant 0 : index
    %7 = vector.load %arg3[%c0_6, %c0_7] : memref<128x384xbf16, #tpu.memory_space<vmem>>, vector<128x384xbf16>
    %c0_8 = arith.constant 0 : index
    %c0_9 = arith.constant 0 : index
    %8 = vector.load %arg4[%c0_8, %c0_9] : memref<1x384xf32, #tpu.memory_space<vmem>>, vector<1x256xf32>
    %c0_10 = arith.constant 0 : index
    %c256 = arith.constant 256 : index
    %9 = vector.load %arg4[%c0_10, %c256] : memref<1x384xf32, #tpu.memory_space<vmem>>, vector<1x128xf32>
    %c0_11 = arith.constant 0 : index
    %c0_12 = arith.constant 0 : index
    %10 = vector.load %arg5[%c0_11, %c0_12] : memref<1x128xf32, #tpu.memory_space<vmem>>, vector<1x128xf32>
    %c0_13 = arith.constant 0 : index
    %c0_14 = arith.constant 0 : index
    %11 = vector.load %arg8[%c0_13, %c0_14] : memref<8x128xf32, #tpu.memory_space<vmem>>, vector<8x128xf32>
    %c0_i32_15 = arith.constant 0 : i32
    %c8_i32 = arith.constant 8 : i32
    %12 = arith.muli %c0_i32_15, %c8_i32 : i32
    %13 = tpu.assume_multiple %12, 8 : i32
    %14 = arith.index_cast %13 : i32 to index
    %c0_16 = arith.constant 0 : index
    %15 = vector.load %arg9[%14, %c0_16] : memref<64x384xf32, #tpu.memory_space<vmem>>, vector<8x384xf32>
    %16 = arith.truncf %11 : vector<8x128xf32> to vector<8x128xbf16>
    %cst_17 = arith.constant dense<0.000000e+00> : vector<8x384xf32>
    %17 = tpu.matmul %16, %7, %cst_17 {dimension_numbers = #tpu.dot_dimension_numbers<[1], [0], [0], [1], [0, 0, 1, 1], [], []>} : vector<8x128xbf16>, vector<128x384xbf16>, vector<8x384xf32> -> vector<8x384xf32>
    %18 = vector.extract_strided_slice %15 {offsets = [0, 0], sizes = [8, 256], strides = [1, 1]} : vector<8x384xf32> to vector<8x256xf32>
    %19 = vector.extract_strided_slice %17 {offsets = [0, 0], sizes = [8, 256], strides = [1, 1]} : vector<8x384xf32> to vector<8x256xf32>
    %20 = arith.addf %18, %19 : vector<8x256xf32>
    %21 = vector.broadcast %8 : vector<1x256xf32> to vector<8x256xf32>
    %22 = arith.addf %20, %21 : vector<8x256xf32>
    %23 = arith.negf %22 : vector<8x256xf32>
    %24 = math.exp %23 : vector<8x256xf32>
    %cst_18 = arith.constant 1.000000e+00 : f32
    %25 = vector.broadcast %cst_18 : f32 to vector<8x256xf32>
    %26 = arith.addf %25, %24 : vector<8x256xf32>
    %27 = arith.divf %25, %26 : vector<8x256xf32>
    %28 = vector.extract_strided_slice %27 {offsets = [0, 0], sizes = [8, 128], strides = [1, 1]} : vector<8x256xf32> to vector<8x128xf32>
    %29 = vector.extract_strided_slice %27 {offsets = [0, 128], sizes = [8, 128], strides = [1, 1]} : vector<8x256xf32> to vector<8x128xf32>
    %30 = vector.extract_strided_slice %15 {offsets = [0, 256], sizes = [8, 128], strides = [1, 1]} : vector<8x384xf32> to vector<8x128xf32>
    %31 = vector.broadcast %9 : vector<1x128xf32> to vector<8x128xf32>
    %32 = arith.addf %30, %31 : vector<8x128xf32>
    %33 = vector.extract_strided_slice %17 {offsets = [0, 256], sizes = [8, 128], strides = [1, 1]} : vector<8x384xf32> to vector<8x128xf32>
    %34 = vector.broadcast %10 : vector<1x128xf32> to vector<8x128xf32>
    %35 = arith.addf %33, %34 : vector<8x128xf32>
    %36 = arith.mulf %28, %35 : vector<8x128xf32>
    %37 = arith.addf %32, %36 : vector<8x128xf32>
    %38 = math.tanh %37 : vector<8x128xf32>
    %39 = arith.subf %11, %38 : vector<8x128xf32>
    %40 = arith.mulf %29, %39 : vector<8x128xf32>
    %41 = arith.addf %38, %40 : vector<8x128xf32>
    %c8_i32_19 = arith.constant 8 : i32
    %42 = arith.muli %arg0, %c8_i32_19 : i32
    %43 = arith.addi %42, %c0_i32_15 : i32
    %c8_i32_20 = arith.constant 8 : i32
    %44 = arith.cmpi slt, %43, %c8_i32_20 : i32
    %45 = arith.select %44, %41, %11 : vector<8x128xf32>
    %46 = arith.index_cast %13 : i32 to index
    %c0_21 = arith.constant 0 : index
    %47 = vector.load %arg6[%46, %c0_21] : memref<64x128xf32, #tpu.memory_space<vmem>>, vector<8x128xf32>
    tpu.vector_store %arg6[%46, %c0_21], %45 {strides = array<i32>} : memref<64x128xf32, #tpu.memory_space<vmem>>, vector<8x128xf32>,
    %c1_i32 = arith.constant 1 : i32
    %c8_i32_22 = arith.constant 8 : i32
    %48 = arith.muli %c1_i32, %c8_i32_22 : i32
    %49 = tpu.assume_multiple %48, 8 : i32
    %50 = arith.index_cast %49 : i32 to index
    %c0_23 = arith.constant 0 : index
    %51 = vector.load %arg9[%50, %c0_23] : memref<64x384xf32, #tpu.memory_space<vmem>>, vector<8x384xf32>
    %52 = arith.truncf %45 : vector<8x128xf32> to vector<8x128xbf16>
    %cst_24 = arith.constant dense<0.000000e+00> : vector<8x384xf32>
    %53 = tpu.matmul %52, %7, %cst_24 {dimension_numbers = #tpu.dot_dimension_numbers<[1], [0], [0], [1], [0, 0, 1, 1], [], []>} : vector<8x128xbf16>, vector<128x384xbf16>, vector<8x384xf32> -> vector<8x384xf32>
    %54 = vector.extract_strided_slice %51 {offsets = [0, 0], sizes = [8, 256], strides = [1, 1]} : vector<8x384xf32> to vector<8x256xf32>
    %55 = vector.extract_strided_slice %53 {offsets = [0, 0], sizes = [8, 256], strides = [1, 1]} : vector<8x384xf32> to vector<8x256xf32>
    %56 = arith.addf %54, %55 : vector<8x256xf32>
    %57 = vector.broadcast %8 : vector<1x256xf32> to vector<8x256xf32>
    %58 = arith.addf %56, %57 : vector<8x256xf32>
    %59 = arith.negf %58 : vector<8x256xf32>
    %60 = math.exp %59 : vector<8x256xf32>
    %cst_25 = arith.constant 1.000000e+00 : f32
    %61 = vector.broadcast %cst_25 : f32 to vector<8x256xf32>
    %62 = arith.addf %61, %60 : vector<8x256xf32>
    %63 = arith.divf %61, %62 : vector<8x256xf32>
    %64 = vector.extract_strided_slice %63 {offsets = [0, 0], sizes = [8, 128], strides = [1, 1]} : vector<8x256xf32> to vector<8x128xf32>
    %65 = vector.extract_strided_slice %63 {offsets = [0, 128], sizes = [8, 128], strides = [1, 1]} : vector<8x256xf32> to vector<8x128xf32>
    %66 = vector.extract_strided_slice %51 {offsets = [0, 256], sizes = [8, 128], strides = [1, 1]} : vector<8x384xf32> to vector<8x128xf32>
    %67 = vector.broadcast %9 : vector<1x128xf32> to vector<8x128xf32>
    %68 = arith.addf %66, %67 : vector<8x128xf32>
    %69 = vector.extract_strided_slice %53 {offsets = [0, 256], sizes = [8, 128], strides = [1, 1]} : vector<8x384xf32> to vector<8x128xf32>
    %70 = vector.broadcast %10 : vector<1x128xf32> to vector<8x128xf32>
    %71 = arith.addf %69, %70 : vector<8x128xf32>
    %72 = arith.mulf %64, %71 : vector<8x128xf32>
    %73 = arith.addf %68, %72 : vector<8x128xf32>
    %74 = math.tanh %73 : vector<8x128xf32>
    %75 = arith.subf %45, %74 : vector<8x128xf32>
    %76 = arith.mulf %65, %75 : vector<8x128xf32>
    %77 = arith.addf %74, %76 : vector<8x128xf32>
    %c8_i32_26 = arith.constant 8 : i32
    %78 = arith.muli %arg0, %c8_i32_26 : i32
    %79 = arith.addi %78, %c1_i32 : i32
    %c8_i32_27 = arith.constant 8 : i32
    %80 = arith.cmpi slt, %79, %c8_i32_27 : i32
    %81 = arith.select %80, %77, %45 : vector<8x128xf32>
    %82 = arith.index_cast %49 : i32 to index
    %c0_28 = arith.constant 0 : index
    %83 = vector.load %arg6[%82, %c0_28] : memref<64x128xf32, #tpu.memory_space<vmem>>, vector<8x128xf32>
    tpu.vector_store %arg6[%82, %c0_28], %81 {strides = array<i32>} : memref<64x128xf32, #tpu.memory_space<vmem>>, vector<8x128xf32>,
    %c2_i32 = arith.constant 2 : i32
    %c8_i32_29 = arith.constant 8 : i32
    %84 = arith.muli %c2_i32, %c8_i32_29 : i32
    %85 = tpu.assume_multiple %84, 8 : i32
    %86 = arith.index_cast %85 : i32 to index
    %c0_30 = arith.constant 0 : index
    %87 = vector.load %arg9[%86, %c0_30] : memref<64x384xf32, #tpu.memory_space<vmem>>, vector<8x384xf32>
    %88 = arith.truncf %81 : vector<8x128xf32> to vector<8x128xbf16>
    %cst_31 = arith.constant dense<0.000000e+00> : vector<8x384xf32>
    %89 = tpu.matmul %88, %7, %cst_31 {dimension_numbers = #tpu.dot_dimension_numbers<[1], [0], [0], [1], [0, 0, 1, 1], [], []>} : vector<8x128xbf16>, vector<128x384xbf16>, vector<8x384xf32> -> vector<8x384xf32>
    %90 = vector.extract_strided_slice %87 {offsets = [0, 0], sizes = [8, 256], strides = [1, 1]} : vector<8x384xf32> to vector<8x256xf32>
    %91 = vector.extract_strided_slice %89 {offsets = [0, 0], sizes = [8, 256], strides = [1, 1]} : vector<8x384xf32> to vector<8x256xf32>
    %92 = arith.addf %90, %91 : vector<8x256xf32>
    %93 = vector.broadcast %8 : vector<1x256xf32> to vector<8x256xf32>
    %94 = arith.addf %92, %93 : vector<8x256xf32>
    %95 = arith.negf %94 : vector<8x256xf32>
    %96 = math.exp %95 : vector<8x256xf32>
    %cst_32 = arith.constant 1.000000e+00 : f32
    %97 = vector.broadcast %cst_32 : f32 to vector<8x256xf32>
    %98 = arith.addf %97, %96 : vector<8x256xf32>
    %99 = arith.divf %97, %98 : vector<8x256xf32>
    %100 = vector.extract_strided_slice %99 {offsets = [0, 0], sizes = [8, 128], strides = [1, 1]} : vector<8x256xf32> to vector<8x128xf32>
    %101 = vector.extract_strided_slice %99 {offsets = [0, 128], sizes = [8, 128], strides = [1, 1]} : vector<8x256xf32> to vector<8x128xf32>
    %102 = vector.extract_strided_slice %87 {offsets = [0, 256], sizes = [8, 128], strides = [1, 1]} : vector<8x384xf32> to vector<8x128xf32>
    %103 = vector.broadcast %9 : vector<1x128xf32> to vector<8x128xf32>
    %104 = arith.addf %102, %103 : vector<8x128xf32>
    %105 = vector.extract_strided_slice %89 {offsets = [0, 256], sizes = [8, 128], strides = [1, 1]} : vector<8x384xf32> to vector<8x128xf32>
    %106 = vector.broadcast %10 : vector<1x128xf32> to vector<8x128xf32>
    %107 = arith.addf %105, %106 : vector<8x128xf32>
    %108 = arith.mulf %100, %107 : vector<8x128xf32>
    %109 = arith.addf %104, %108 : vector<8x128xf32>
    %110 = math.tanh %109 : vector<8x128xf32>
    %111 = arith.subf %81, %110 : vector<8x128xf32>
    %112 = arith.mulf %101, %111 : vector<8x128xf32>
    %113 = arith.addf %110, %112 : vector<8x128xf32>
    %c8_i32_33 = arith.constant 8 : i32
    %114 = arith.muli %arg0, %c8_i32_33 : i32
    %115 = arith.addi %114, %c2_i32 : i32
    %c8_i32_34 = arith.constant 8 : i32
    %116 = arith.cmpi slt, %115, %c8_i32_34 : i32
    %117 = arith.select %116, %113, %81 : vector<8x128xf32>
    %118 = arith.index_cast %85 : i32 to index
    %c0_35 = arith.constant 0 : index
    %119 = vector.load %arg6[%118, %c0_35] : memref<64x128xf32, #tpu.memory_space<vmem>>, vector<8x128xf32>
    tpu.vector_store %arg6[%118, %c0_35], %117 {strides = array<i32>} : memref<64x128xf32, #tpu.memory_space<vmem>>, vector<8x128xf32>,
    %c3_i32 = arith.constant 3 : i32
    %c8_i32_36 = arith.constant 8 : i32
    %120 = arith.muli %c3_i32, %c8_i32_36 : i32
    %121 = tpu.assume_multiple %120, 8 : i32
    %122 = arith.index_cast %121 : i32 to index
    %c0_37 = arith.constant 0 : index
    %123 = vector.load %arg9[%122, %c0_37] : memref<64x384xf32, #tpu.memory_space<vmem>>, vector<8x384xf32>
    %124 = arith.truncf %117 : vector<8x128xf32> to vector<8x128xbf16>
    %cst_38 = arith.constant dense<0.000000e+00> : vector<8x384xf32>
    %125 = tpu.matmul %124, %7, %cst_38 {dimension_numbers = #tpu.dot_dimension_numbers<[1], [0], [0], [1], [0, 0, 1, 1], [], []>} : vector<8x128xbf16>, vector<128x384xbf16>, vector<8x384xf32> -> vector<8x384xf32>
    %126 = vector.extract_strided_slice %123 {offsets = [0, 0], sizes = [8, 256], strides = [1, 1]} : vector<8x384xf32> to vector<8x256xf32>
    %127 = vector.extract_strided_slice %125 {offsets = [0, 0], sizes = [8, 256], strides = [1, 1]} : vector<8x384xf32> to vector<8x256xf32>
    %128 = arith.addf %126, %127 : vector<8x256xf32>
    %129 = vector.broadcast %8 : vector<1x256xf32> to vector<8x256xf32>
    %130 = arith.addf %128, %129 : vector<8x256xf32>
    %131 = arith.negf %130 : vector<8x256xf32>
    %132 = math.exp %131 : vector<8x256xf32>
    %cst_39 = arith.constant 1.000000e+00 : f32
    %133 = vector.broadcast %cst_39 : f32 to vector<8x256xf32>
    %134 = arith.addf %133, %132 : vector<8x256xf32>
    %135 = arith.divf %133, %134 : vector<8x256xf32>
    %136 = vector.extract_strided_slice %135 {offsets = [0, 0], sizes = [8, 128], strides = [1, 1]} : vector<8x256xf32> to vector<8x128xf32>
    %137 = vector.extract_strided_slice %135 {offsets = [0, 128], sizes = [8, 128], strides = [1, 1]} : vector<8x256xf32> to vector<8x128xf32>
    %138 = vector.extract_strided_slice %123 {offsets = [0, 256], sizes = [8, 128], strides = [1, 1]} : vector<8x384xf32> to vector<8x128xf32>
    %139 = vector.broadcast %9 : vector<1x128xf32> to vector<8x128xf32>
    %140 = arith.addf %138, %139 : vector<8x128xf32>
    %141 = vector.extract_strided_slice %125 {offsets = [0, 256], sizes = [8, 128], strides = [1, 1]} : vector<8x384xf32> to vector<8x128xf32>
    %142 = vector.broadcast %10 : vector<1x128xf32> to vector<8x128xf32>
    %143 = arith.addf %141, %142 : vector<8x128xf32>
    %144 = arith.mulf %136, %143 : vector<8x128xf32>
    %145 = arith.addf %140, %144 : vector<8x128xf32>
    %146 = math.tanh %145 : vector<8x128xf32>
    %147 = arith.subf %117, %146 : vector<8x128xf32>
    %148 = arith.mulf %137, %147 : vector<8x128xf32>
    %149 = arith.addf %146, %148 : vector<8x128xf32>
    %c8_i32_40 = arith.constant 8 : i32
    %150 = arith.muli %arg0, %c8_i32_40 : i32
    %151 = arith.addi %150, %c3_i32 : i32
    %c8_i32_41 = arith.constant 8 : i32
    %152 = arith.cmpi slt, %151, %c8_i32_41 : i32
    %153 = arith.select %152, %149, %117 : vector<8x128xf32>
    %154 = arith.index_cast %121 : i32 to index
    %c0_42 = arith.constant 0 : index
    %155 = vector.load %arg6[%154, %c0_42] : memref<64x128xf32, #tpu.memory_space<vmem>>, vector<8x128xf32>
    tpu.vector_store %arg6[%154, %c0_42], %153 {strides = array<i32>} : memref<64x128xf32, #tpu.memory_space<vmem>>, vector<8x128xf32>,
    %c4_i32 = arith.constant 4 : i32
    %c8_i32_43 = arith.constant 8 : i32
    %156 = arith.muli %c4_i32, %c8_i32_43 : i32
    %157 = tpu.assume_multiple %156, 8 : i32
    %158 = arith.index_cast %157 : i32 to index
    %c0_44 = arith.constant 0 : index
    %159 = vector.load %arg9[%158, %c0_44] : memref<64x384xf32, #tpu.memory_space<vmem>>, vector<8x384xf32>
    %160 = arith.truncf %153 : vector<8x128xf32> to vector<8x128xbf16>
    %cst_45 = arith.constant dense<0.000000e+00> : vector<8x384xf32>
    %161 = tpu.matmul %160, %7, %cst_45 {dimension_numbers = #tpu.dot_dimension_numbers<[1], [0], [0], [1], [0, 0, 1, 1], [], []>} : vector<8x128xbf16>, vector<128x384xbf16>, vector<8x384xf32> -> vector<8x384xf32>
    %162 = vector.extract_strided_slice %159 {offsets = [0, 0], sizes = [8, 256], strides = [1, 1]} : vector<8x384xf32> to vector<8x256xf32>
    %163 = vector.extract_strided_slice %161 {offsets = [0, 0], sizes = [8, 256], strides = [1, 1]} : vector<8x384xf32> to vector<8x256xf32>
    %164 = arith.addf %162, %163 : vector<8x256xf32>
    %165 = vector.broadcast %8 : vector<1x256xf32> to vector<8x256xf32>
    %166 = arith.addf %164, %165 : vector<8x256xf32>
    %167 = arith.negf %166 : vector<8x256xf32>
    %168 = math.exp %167 : vector<8x256xf32>
    %cst_46 = arith.constant 1.000000e+00 : f32
    %169 = vector.broadcast %cst_46 : f32 to vector<8x256xf32>
    %170 = arith.addf %169, %168 : vector<8x256xf32>
    %171 = arith.divf %169, %170 : vector<8x256xf32>
    %172 = vector.extract_strided_slice %171 {offsets = [0, 0], sizes = [8, 128], strides = [1, 1]} : vector<8x256xf32> to vector<8x128xf32>
    %173 = vector.extract_strided_slice %171 {offsets = [0, 128], sizes = [8, 128], strides = [1, 1]} : vector<8x256xf32> to vector<8x128xf32>
    %174 = vector.extract_strided_slice %159 {offsets = [0, 256], sizes = [8, 128], strides = [1, 1]} : vector<8x384xf32> to vector<8x128xf32>
    %175 = vector.broadcast %9 : vector<1x128xf32> to vector<8x128xf32>
    %176 = arith.addf %174, %175 : vector<8x128xf32>
    %177 = vector.extract_strided_slice %161 {offsets = [0, 256], sizes = [8, 128], strides = [1, 1]} : vector<8x384xf32> to vector<8x128xf32>
    %178 = vector.broadcast %10 : vector<1x128xf32> to vector<8x128xf32>
    %179 = arith.addf %177, %178 : vector<8x128xf32>
    %180 = arith.mulf %172, %179 : vector<8x128xf32>
    %181 = arith.addf %176, %180 : vector<8x128xf32>
    %182 = math.tanh %181 : vector<8x128xf32>
    %183 = arith.subf %153, %182 : vector<8x128xf32>
    %184 = arith.mulf %173, %183 : vector<8x128xf32>
    %185 = arith.addf %182, %184 : vector<8x128xf32>
    %c8_i32_47 = arith.constant 8 : i32
    %186 = arith.muli %arg0, %c8_i32_47 : i32
    %187 = arith.addi %186, %c4_i32 : i32
    %c8_i32_48 = arith.constant 8 : i32
    %188 = arith.cmpi slt, %187, %c8_i32_48 : i32
    %189 = arith.select %188, %185, %153 : vector<8x128xf32>
    %190 = arith.index_cast %157 : i32 to index
    %c0_49 = arith.constant 0 : index
    %191 = vector.load %arg6[%190, %c0_49] : memref<64x128xf32, #tpu.memory_space<vmem>>, vector<8x128xf32>
    tpu.vector_store %arg6[%190, %c0_49], %189 {strides = array<i32>} : memref<64x128xf32, #tpu.memory_space<vmem>>, vector<8x128xf32>,
    %c5_i32 = arith.constant 5 : i32
    %c8_i32_50 = arith.constant 8 : i32
    %192 = arith.muli %c5_i32, %c8_i32_50 : i32
    %193 = tpu.assume_multiple %192, 8 : i32
    %194 = arith.index_cast %193 : i32 to index
    %c0_51 = arith.constant 0 : index
    %195 = vector.load %arg9[%194, %c0_51] : memref<64x384xf32, #tpu.memory_space<vmem>>, vector<8x384xf32>
    %196 = arith.truncf %189 : vector<8x128xf32> to vector<8x128xbf16>
    %cst_52 = arith.constant dense<0.000000e+00> : vector<8x384xf32>
    %197 = tpu.matmul %196, %7, %cst_52 {dimension_numbers = #tpu.dot_dimension_numbers<[1], [0], [0], [1], [0, 0, 1, 1], [], []>} : vector<8x128xbf16>, vector<128x384xbf16>, vector<8x384xf32> -> vector<8x384xf32>
    %198 = vector.extract_strided_slice %195 {offsets = [0, 0], sizes = [8, 256], strides = [1, 1]} : vector<8x384xf32> to vector<8x256xf32>
    %199 = vector.extract_strided_slice %197 {offsets = [0, 0], sizes = [8, 256], strides = [1, 1]} : vector<8x384xf32> to vector<8x256xf32>
    %200 = arith.addf %198, %199 : vector<8x256xf32>
    %201 = vector.broadcast %8 : vector<1x256xf32> to vector<8x256xf32>
    %202 = arith.addf %200, %201 : vector<8x256xf32>
    %203 = arith.negf %202 : vector<8x256xf32>
    %204 = math.exp %203 : vector<8x256xf32>
    %cst_53 = arith.constant 1.000000e+00 : f32
    %205 = vector.broadcast %cst_53 : f32 to vector<8x256xf32>
    %206 = arith.addf %205, %204 : vector<8x256xf32>
    %207 = arith.divf %205, %206 : vector<8x256xf32>
    %208 = vector.extract_strided_slice %207 {offsets = [0, 0], sizes = [8, 128], strides = [1, 1]} : vector<8x256xf32> to vector<8x128xf32>
    %209 = vector.extract_strided_slice %207 {offsets = [0, 128], sizes = [8, 128], strides = [1, 1]} : vector<8x256xf32> to vector<8x128xf32>
    %210 = vector.extract_strided_slice %195 {offsets = [0, 256], sizes = [8, 128], strides = [1, 1]} : vector<8x384xf32> to vector<8x128xf32>
    %211 = vector.broadcast %9 : vector<1x128xf32> to vector<8x128xf32>
    %212 = arith.addf %210, %211 : vector<8x128xf32>
    %213 = vector.extract_strided_slice %197 {offsets = [0, 256], sizes = [8, 128], strides = [1, 1]} : vector<8x384xf32> to vector<8x128xf32>
    %214 = vector.broadcast %10 : vector<1x128xf32> to vector<8x128xf32>
    %215 = arith.addf %213, %214 : vector<8x128xf32>
    %216 = arith.mulf %208, %215 : vector<8x128xf32>
    %217 = arith.addf %212, %216 : vector<8x128xf32>
    %218 = math.tanh %217 : vector<8x128xf32>
    %219 = arith.subf %189, %218 : vector<8x128xf32>
    %220 = arith.mulf %209, %219 : vector<8x128xf32>
    %221 = arith.addf %218, %220 : vector<8x128xf32>
    %c8_i32_54 = arith.constant 8 : i32
    %222 = arith.muli %arg0, %c8_i32_54 : i32
    %223 = arith.addi %222, %c5_i32 : i32
    %c8_i32_55 = arith.constant 8 : i32
    %224 = arith.cmpi slt, %223, %c8_i32_55 : i32
    %225 = arith.select %224, %221, %189 : vector<8x128xf32>
    %226 = arith.index_cast %193 : i32 to index
    %c0_56 = arith.constant 0 : index
    %227 = vector.load %arg6[%226, %c0_56] : memref<64x128xf32, #tpu.memory_space<vmem>>, vector<8x128xf32>
    tpu.vector_store %arg6[%226, %c0_56], %225 {strides = array<i32>} : memref<64x128xf32, #tpu.memory_space<vmem>>, vector<8x128xf32>,
    %c6_i32 = arith.constant 6 : i32
    %c8_i32_57 = arith.constant 8 : i32
    %228 = arith.muli %c6_i32, %c8_i32_57 : i32
    %229 = tpu.assume_multiple %228, 8 : i32
    %230 = arith.index_cast %229 : i32 to index
    %c0_58 = arith.constant 0 : index
    %231 = vector.load %arg9[%230, %c0_58] : memref<64x384xf32, #tpu.memory_space<vmem>>, vector<8x384xf32>
    %232 = arith.truncf %225 : vector<8x128xf32> to vector<8x128xbf16>
    %cst_59 = arith.constant dense<0.000000e+00> : vector<8x384xf32>
    %233 = tpu.matmul %232, %7, %cst_59 {dimension_numbers = #tpu.dot_dimension_numbers<[1], [0], [0], [1], [0, 0, 1, 1], [], []>} : vector<8x128xbf16>, vector<128x384xbf16>, vector<8x384xf32> -> vector<8x384xf32>
    %234 = vector.extract_strided_slice %231 {offsets = [0, 0], sizes = [8, 256], strides = [1, 1]} : vector<8x384xf32> to vector<8x256xf32>
    %235 = vector.extract_strided_slice %233 {offsets = [0, 0], sizes = [8, 256], strides = [1, 1]} : vector<8x384xf32> to vector<8x256xf32>
    %236 = arith.addf %234, %235 : vector<8x256xf32>
    %237 = vector.broadcast %8 : vector<1x256xf32> to vector<8x256xf32>
    %238 = arith.addf %236, %237 : vector<8x256xf32>
    %239 = arith.negf %238 : vector<8x256xf32>
    %240 = math.exp %239 : vector<8x256xf32>
    %cst_60 = arith.constant 1.000000e+00 : f32
    %241 = vector.broadcast %cst_60 : f32 to vector<8x256xf32>
    %242 = arith.addf %241, %240 : vector<8x256xf32>
    %243 = arith.divf %241, %242 : vector<8x256xf32>
    %244 = vector.extract_strided_slice %243 {offsets = [0, 0], sizes = [8, 128], strides = [1, 1]} : vector<8x256xf32> to vector<8x128xf32>
    %245 = vector.extract_strided_slice %243 {offsets = [0, 128], sizes = [8, 128], strides = [1, 1]} : vector<8x256xf32> to vector<8x128xf32>
    %246 = vector.extract_strided_slice %231 {offsets = [0, 256], sizes = [8, 128], strides = [1, 1]} : vector<8x384xf32> to vector<8x128xf32>
    %247 = vector.broadcast %9 : vector<1x128xf32> to vector<8x128xf32>
    %248 = arith.addf %246, %247 : vector<8x128xf32>
    %249 = vector.extract_strided_slice %233 {offsets = [0, 256], sizes = [8, 128], strides = [1, 1]} : vector<8x384xf32> to vector<8x128xf32>
    %250 = vector.broadcast %10 : vector<1x128xf32> to vector<8x128xf32>
    %251 = arith.addf %249, %250 : vector<8x128xf32>
    %252 = arith.mulf %244, %251 : vector<8x128xf32>
    %253 = arith.addf %248, %252 : vector<8x128xf32>
    %254 = math.tanh %253 : vector<8x128xf32>
    %255 = arith.subf %225, %254 : vector<8x128xf32>
    %256 = arith.mulf %245, %255 : vector<8x128xf32>
    %257 = arith.addf %254, %256 : vector<8x128xf32>
    %c8_i32_61 = arith.constant 8 : i32
    %258 = arith.muli %arg0, %c8_i32_61 : i32
    %259 = arith.addi %258, %c6_i32 : i32
    %c8_i32_62 = arith.constant 8 : i32
    %260 = arith.cmpi slt, %259, %c8_i32_62 : i32
    %261 = arith.select %260, %257, %225 : vector<8x128xf32>
    %262 = arith.index_cast %229 : i32 to index
    %c0_63 = arith.constant 0 : index
    %263 = vector.load %arg6[%262, %c0_63] : memref<64x128xf32, #tpu.memory_space<vmem>>, vector<8x128xf32>
    tpu.vector_store %arg6[%262, %c0_63], %261 {strides = array<i32>} : memref<64x128xf32, #tpu.memory_space<vmem>>, vector<8x128xf32>,
    %c7_i32 = arith.constant 7 : i32
    %c8_i32_64 = arith.constant 8 : i32
    %264 = arith.muli %c7_i32, %c8_i32_64 : i32
    %265 = tpu.assume_multiple %264, 8 : i32
    %266 = arith.index_cast %265 : i32 to index
    %c0_65 = arith.constant 0 : index
    %267 = vector.load %arg9[%266, %c0_65] : memref<64x384xf32, #tpu.memory_space<vmem>>, vector<8x384xf32>
    %268 = arith.truncf %261 : vector<8x128xf32> to vector<8x128xbf16>
    %cst_66 = arith.constant dense<0.000000e+00> : vector<8x384xf32>
    %269 = tpu.matmul %268, %7, %cst_66 {dimension_numbers = #tpu.dot_dimension_numbers<[1], [0], [0], [1], [0, 0, 1, 1], [], []>} : vector<8x128xbf16>, vector<128x384xbf16>, vector<8x384xf32> -> vector<8x384xf32>
    %270 = vector.extract_strided_slice %267 {offsets = [0, 0], sizes = [8, 256], strides = [1, 1]} : vector<8x384xf32> to vector<8x256xf32>
    %271 = vector.extract_strided_slice %269 {offsets = [0, 0], sizes = [8, 256], strides = [1, 1]} : vector<8x384xf32> to vector<8x256xf32>
    %272 = arith.addf %270, %271 : vector<8x256xf32>
    %273 = vector.broadcast %8 : vector<1x256xf32> to vector<8x256xf32>
    %274 = arith.addf %272, %273 : vector<8x256xf32>
    %275 = arith.negf %274 : vector<8x256xf32>
    %276 = math.exp %275 : vector<8x256xf32>
    %cst_67 = arith.constant 1.000000e+00 : f32
    %277 = vector.broadcast %cst_67 : f32 to vector<8x256xf32>
    %278 = arith.addf %277, %276 : vector<8x256xf32>
    %279 = arith.divf %277, %278 : vector<8x256xf32>
    %280 = vector.extract_strided_slice %279 {offsets = [0, 0], sizes = [8, 128], strides = [1, 1]} : vector<8x256xf32> to vector<8x128xf32>
    %281 = vector.extract_strided_slice %279 {offsets = [0, 128], sizes = [8, 128], strides = [1, 1]} : vector<8x256xf32> to vector<8x128xf32>
    %282 = vector.extract_strided_slice %267 {offsets = [0, 256], sizes = [8, 128], strides = [1, 1]} : vector<8x384xf32> to vector<8x128xf32>
    %283 = vector.broadcast %9 : vector<1x128xf32> to vector<8x128xf32>
    %284 = arith.addf %282, %283 : vector<8x128xf32>
    %285 = vector.extract_strided_slice %269 {offsets = [0, 256], sizes = [8, 128], strides = [1, 1]} : vector<8x384xf32> to vector<8x128xf32>
    %286 = vector.broadcast %10 : vector<1x128xf32> to vector<8x128xf32>
    %287 = arith.addf %285, %286 : vector<8x128xf32>
    %288 = arith.mulf %280, %287 : vector<8x128xf32>
    %289 = arith.addf %284, %288 : vector<8x128xf32>
    %290 = math.tanh %289 : vector<8x128xf32>
    %291 = arith.subf %261, %290 : vector<8x128xf32>
    %292 = arith.mulf %281, %291 : vector<8x128xf32>
    %293 = arith.addf %290, %292 : vector<8x128xf32>
    %c8_i32_68 = arith.constant 8 : i32
    %294 = arith.muli %arg0, %c8_i32_68 : i32
    %295 = arith.addi %294, %c7_i32 : i32
    %c8_i32_69 = arith.constant 8 : i32
    %296 = arith.cmpi slt, %295, %c8_i32_69 : i32
    %297 = arith.select %296, %293, %261 : vector<8x128xf32>
    %298 = arith.index_cast %265 : i32 to index
    %c0_70 = arith.constant 0 : index
    %299 = vector.load %arg6[%298, %c0_70] : memref<64x128xf32, #tpu.memory_space<vmem>>, vector<8x128xf32>
    tpu.vector_store %arg6[%298, %c0_70], %297 {strides = array<i32>} : memref<64x128xf32, #tpu.memory_space<vmem>>, vector<8x128xf32>,
    %c8_i32_71 = arith.constant 8 : i32
    %c0_72 = arith.constant 0 : index
    %c0_73 = arith.constant 0 : index
    %300 = vector.load %arg8[%c0_72, %c0_73] : memref<8x128xf32, #tpu.memory_space<vmem>>, vector<8x128xf32>
    tpu.vector_store %arg8[%c0_72, %c0_73], %297 {strides = array<i32>} : memref<8x128xf32, #tpu.memory_space<vmem>>, vector<8x128xf32>,
    %c0_74 = arith.constant 0 : index
    %c0_75 = arith.constant 0 : index
    %301 = vector.load %arg7[%c0_74, %c0_75] : memref<8x128xf32, #tpu.memory_space<vmem>>, vector<8x128xf32>
    tpu.vector_store %arg7[%c0_74, %c0_75], %297 {strides = array<i32>} : memref<8x128xf32, #tpu.memory_space<vmem>>, vector<8x128xf32>,
    return
  }
  func.func @transform_0(%arg0: i32) -> (i32, i32) {
    %c0_i32 = arith.constant 0 : i32
    %c0_i32_0 = arith.constant 0 : i32
    return %arg0, %c0_i32 : i32, i32
  }
  func.func @transform_1(%arg0: i32) -> (i32, i32) {
    %c0_i32 = arith.constant 0 : i32
    %c0_i32_0 = arith.constant 0 : i32
    %c0_i32_1 = arith.constant 0 : i32
    return %c0_i32, %c0_i32_0 : i32, i32
  }
  func.func @transform_2(%arg0: i32) -> (i32, i32) {
    %c0_i32 = arith.constant 0 : i32
    %c0_i32_0 = arith.constant 0 : i32
    %c0_i32_1 = arith.constant 0 : i32
    return %c0_i32, %c0_i32_0 : i32, i32
  }
  func.func @transform_3(%arg0: i32) -> (i32, i32) {
    %c0_i32 = arith.constant 0 : i32
    %c0_i32_0 = arith.constant 0 : i32
    %c0_i32_1 = arith.constant 0 : i32
    return %c0_i32, %c0_i32_0 : i32, i32
  }
  func.func @transform_4(%arg0: i32) -> (i32, i32) {
    %c0_i32 = arith.constant 0 : i32
    %c0_i32_0 = arith.constant 0 : i32
    %c0_i32_1 = arith.constant 0 : i32
    return %c0_i32, %c0_i32_0 : i32, i32
  }
  func.func @transform_5(%arg0: i32) -> (i32, i32) {
    %c0_i32 = arith.constant 0 : i32
    %c0_i32_0 = arith.constant 0 : i32
    return %arg0, %c0_i32 : i32, i32
  }
  func.func @transform_6(%arg0: i32) -> (i32, i32) {
    %c0_i32 = arith.constant 0 : i32
    %c0_i32_0 = arith.constant 0 : i32
    %c0_i32_1 = arith.constant 0 : i32
    return %c0_i32, %c0_i32_0 : i32, i32
  }
}

</mosaic_0001>

<bundles_post_ra>
// kernel: encoder_forward.1
= control target key start
LH: loop header
LB: loop body
LE: loop exit
PB: predicated region body
PF: predicated region fallthrough
CT: control target
= control target key end

     0   :  { %v2592_v1 = vmov 0   ;;  %vm96_vm0 = vcmask 261120   ;;  %v2594_v20 = vmov 0.0   ;;  %vm1900_vm1 = vmmov 0   ;;  %s2585_s1 = inlined_call_operand.vmem [shape: bf16[32,384], index: 1, kind: input, shape index: {}]   ;;  %s2586_s0 = inlined_call_operand.vmem [shape: bf16[64,32], index: 0, kind: input, shape index: {}]   ;;  %s2587_s2 = inlined_call_operand.vmem [shape: bf16[128,384], index: 2, kind: input, shape index: {}]   ;;  %s2588_s3 = inlined_call_operand.vmem [shape: f32[1,384], index: 3, kind: input, shape index: {}]   ;;  %s2589_s4 = inlined_call_operand.vmem [shape: f32[1,128], index: 4, kind: input, shape index: {}]   ;;  %s2590_s5 = inlined_call_operand.vmem [shape: f32[64,128], index: 5, kind: output, shape index: {0}]   ;;  %s2591_s6 = inlined_call_operand.vmem [shape: f32[8,128], index: 6, kind: output, shape index: {1}]  }
   0x1   :  { %v1755_v0 = vld [vmem:[%s2585_s1 + $0x4] ss:$12 sps:$4 sm:$0xff]   ;;  %141 = vmatprep.mubr.bf16.mxu0 %v2592_v1  ;;  %v1757_v2 = vld [vmem:[%s2585_s1] ss:$12 sps:$4 sm:$0xff]   ;;  %v1758_v3 = vld [vmem:[%s2585_s1 + $0x1c] ss:$12 sps:$4 sm:$0xff]   ;;  %v526_v57 = vlaneseq }
   0x2   :  { %109 = vmatprep.subr.bf16.mxu0 %v1755_v0  ;;  %v1760_v4 = vld [vmem:[%s2585_s1 + $0x18] ss:$12 sps:$4 sm:$0xff]   ;;  %v1962_v7 = vld [vmem:[%s2587_s2] ss:$12 sps:$4 sm:$0xff]   ;;  %v1968_v8 = vld [vmem:[%s2587_s2 + $0x1c] ss:$12 sps:$4 sm:$0xff]  }
   0x3   :  { %110 = vmatpush1.bf16.msra.mxu0 %v1757_v2  ;;  %v1761_v5 = vld [vmem:[%s2586_s0] sm:$0xff]   ;;  %v1779_v11 = vld [vmem:[%s2585_s1 + $0x8] ss:$12 sps:$4 sm:$0xff]   ;;  %v1993_v13 = vld [vmem:[%s2587_s2 + $0x30] ss:$12 sps:$4 sm:$0xff]   ;;  %v1901_v34 = vmov 0.0|0.0  }
   0x4   :  { %111 = vmatprep.subr.bf16.mxu0 %v1758_v3  ;;  %v1956_v6 = vld [vmem:[%s2587_s2 + $0x4] ss:$12 sps:$4 sm:$0xff]   ;;  %1583 = vmatprep.mubr.msk.bf16.mxu1 %vm96_vm0, %v1761_v5  ;;  %v1982_v10 = vld [vmem:[%s2587_s2 + $0x34] ss:$12 sps:$4 sm:$0xff]   ;;  %v1768_v12 = vld [vmem:[%s2586_s0 + $0x8] sm:$0xff]   ;;  %v527_v61 = vshrl.u32 %v526_v57, 7 }
   0x5   :  { %v1975_v9 = vld [vmem:[%s2587_s2 + $0x18] ss:$12 sps:$4 sm:$0xff]   ;;  %1579 = vmatprep.subr.bf16.mxu1 %v1779_v11  ;;  %v1783_v14 = vld [vmem:[%s2585_s1 + $0x20] ss:$12 sps:$4 sm:$0xff]   ;;  %v2009_v16 = vld [vmem:[%s2587_s2 + $0x48] ss:$12 sps:$4 sm:$0xff]  }
   0x6   :  { %v2003_v15 = vld [vmem:[%s2587_s2 + $0x4c] ss:$12 sps:$4 sm:$0xff]   ;;  %1580 = vmatpush3.bf16.msra.mxu1 %v1779_v11  ;;  %v2016_v17 = vld [vmem:[%s2587_s2 + $0x64] ss:$12 sps:$4 sm:$0xff]   ;;  %v2022_v18 = vld [vmem:[%s2587_s2 + $0x8] ss:$12 sps:$4 sm:$0xff]  }
   0x7   :  { %112 = vmatpush1.bf16.msra.mxu0 %v1760_v4  ;;  %1581 = vmatprep.subr.bf16.mxu1 %v1783_v14  ;;  %v1775_v19 = vld [vmem:[%s2586_s0 + $0x10] sm:$0xff]   ;;  %v2031_v21 = vld [vmem:[%s2587_s2 + $0x60] ss:$12 sps:$4 sm:$0xff]   ;;  %v2037_v22 = vld [vmem:[%s2587_s2 + $0x7c] ss:$12 sps:$4 sm:$0xff]  }
   0x8   :  { %442 = vmatprep.subr.bf16.mxu0 %v1956_v6  ;;  %v2045_v23 = vld [vmem:[%s2587_s2 + $0x20] ss:$12 sps:$4 sm:$0xff]   ;;  %v2054_v24 = vld [vmem:[%s2587_s2 + $0x78] ss:$12 sps:$4 sm:$0xff]   ;;  %v2077_v28 = vld [vmem:[%s2587_s2 + $0x90] ss:$12 sps:$4 sm:$0xff]  }
   0x9   :  { %v2061_v25 = vld [vmem:[%s2587_s2 + $0x94] ss:$12 sps:$4 sm:$0xff]   ;;  %v2067_v26 = vld [vmem:[%s2587_s2 + $0x38] ss:$12 sps:$4 sm:$0xff]   ;;  %v2090_v30 = vld [vmem:[%s2587_s2 + $0x50] ss:$12 sps:$4 sm:$0xff]  }
   0xa   :  { %1444 = vmatmul.mubr.msk.bf16.vlgmr.msra.gmra.mrb[0].mxu0 %vm96_vm0, %v1761_v5  ;;  %1582 = vmatpush3.bf16.msra.mxu1 %v1783_v14  ;;  %v1784_v27 = vld [vmem:[%s2586_s0 + $0x18] sm:$0xff]   ;;  %v2100_v31 = vld [vmem:[%s2587_s2 + $0xa8] ss:$12 sps:$4 sm:$0xff]   ;;  %v2116_v33 = vld [vmem:[%s2587_s2 + $0x80] ss:$12 sps:$4 sm:$0xff]   ;;  %v528_v14 = vsub.s32 0, %v527_v61 }
   0xb   :  { %443 = vmatpush1.bf16.msra.mxu0 %v1962_v7  ;;  %151 = vmatprep.mubr.bf16.mxu0 %v2592_v1  ;;  %v2084_v29 = vld [vmem:[%s2587_s2 + $0xac] ss:$12 sps:$4 sm:$0xff]   ;;  %v2108_v32 = vld [vmem:[%s2587_s2 + $0x68] ss:$12 sps:$4 sm:$0xff]   ;;  %v2135_v36 = vld [vmem:[%s2587_s2 + $0xb0] ss:$12 sps:$4 sm:$0xff]  }
   0xc   :  { %444 = vmatprep.subr.bf16.mxu0 %v1968_v8  ;;  %1591 = vmatprep.subr.bf16.mxu1 %v2594_v20  ;;  %v2126_v35 = vld [vmem:[%s2587_s2 + $0x98] ss:$12 sps:$4 sm:$0xff]   ;;  %v1478_v45 = vld [vmem:[%s2588_s3 + $0x2] ss:$0 sm:$0xff] }
   0xd   :  { %1584 = vmatmul.mubr.msk.bf16.vlgmr.msra.gmra.mrb[0].mxu1 %vm96_vm0, %v1768_v12 }
   0xe   :  { %1592 = vmatpush3.bf16.msra.mxu1 %v2022_v18  ;;  %1587 = vmatprep.mubr.msk.bf16.mxu1 %vm96_vm0, %v1775_v19 }
   0xf   :  { %445 = vmatpush1.bf16.msra.mxu0 %v1975_v9  ;;  %1593 = vmatprep.subr.bf16.mxu1 %v2594_v20 }
  0x10   :  { %446 = vmatprep.subr.bf16.mxu0 %v1982_v10 }
  0x12   :  { %1445 = vmatmul.mubr.msk.bf16.gmra.mrb[4].mxu0 %vm96_vm0, %v1768_v12  ;;  %1594 = vmatpush3.bf16.msra.mxu1 %v2045_v23 }
  0x13   :  { %447 = vmatpush1.bf16.msra.mxu0 %v1993_v13  ;;  %161 = vmatprep.mubr.bf16.mxu0 %v2592_v1 }
  0x14   :  { %448 = vmatprep.subr.bf16.mxu0 %v2003_v15  ;;  %1595 = vmatprep.subr.bf16.mxu1 %v2594_v20 }
  0x15   :  { %1588 = vmatmul.mubr.msk.bf16.gmra.mrb[4].mxu1 %vm96_vm0, %v1784_v27 }
  0x16   :  { %1596 = vmatpush3.bf16.msra.mxu1 %v2067_v26  ;;  %1607 = vmatprep.mubr.msk.bf16.mxu1 %vm1900_vm1, %v2594_v20 }
  0x17   :  { %449 = vmatpush1.bf16.msra.mxu0 %v2009_v16  ;;  %1597 = vmatprep.subr.bf16.mxu1 %v2594_v20 }
  0x18   :  { %450 = vmatprep.subr.bf16.mxu0 %v2016_v17 }
  0x1a   :  { %1446 = vmatmul.mubr.msk.bf16.gmra.mrb[8].mxu0 %vm96_vm0, %v1775_v19  ;;  %1598 = vmatpush3.bf16.msra.mxu1 %v2090_v30  ;;  %v303_v19 = vld [vmem:[%s2588_s3] sm:$0x3] }
  0x1b   :  { %451 = vmatpush1.bf16.msra.mxu0 %v2031_v21  ;;  %171 = vmatprep.mubr.bf16.mxu0 %v2592_v1 }
  0x1c   :  { %452 = vmatprep.subr.bf16.mxu0 %v2037_v22  ;;  %1599 = vmatprep.subr.bf16.mxu1 %v2594_v20 }
  0x1e   :  { %1600 = vmatpush3.bf16.msra.mxu1 %v2108_v32 }
  0x1f   :  { %453 = vmatpush1.bf16.msra.mxu0 %v2054_v24  ;;  %1601 = vmatprep.subr.bf16.mxu1 %v2594_v20 }
  0x20   :  { %454 = vmatprep.subr.bf16.mxu0 %v2061_v25 }
  0x22   :  { %1447 = vmatmul.mubr.msk.bf16.gmra.mrb[12].mxu0 %vm96_vm0, %v1784_v27  ;;  %1602 = vmatpush3.bf16.msra.mxu1 %v2116_v33  ;;  %v2219_v27 = vrot.slane %v303_v19, %v528_v14 }
  0x23   :  { %455 = vmatpush1.bf16.msra.mxu0 %v2077_v28  ;;  %474 = vmatprep.mubr.bf16.mxu0 %v2592_v1 }
  0x24   :  { %456 = vmatprep.subr.bf16.mxu0 %v2084_v29  ;;  %1603 = vmatprep.subr.bf16.mxu1 %v2594_v20 }
  0x26   :  { %1604 = vmatpush3.bf16.msra.mxu1 %v2126_v35 }
  0x27   :  { %457 = vmatpush1.bf16.msra.mxu0 %v2100_v31  ;;  %1605 = vmatprep.subr.bf16.mxu1 %v2594_v20 }
  0x28   :  { %584 = vmatprep.subr.bf16.mxu0 %v1956_v6 }
  0x2a   :  { %475 = vmatmul.mubr.bf16.vlgmr.msra.gmra.mrb[16].mxu0 %v1901_v34  ;;  %1606 = vmatpush3.bf16.msra.mxu1 %v2135_v36 }
  0x2b   :  { %585 = vmatpush1.bf16.msra.mxu0 %v1962_v7  ;;  %616 = vmatprep.mubr.bf16.mxu0 %v2592_v1 }
  0x2c   :  { %586 = vmatprep.subr.bf16.mxu0 %v1968_v8  ;;  %1611 = vmatprep.subr.bf16.mxu1 %v2594_v20 }
  0x2d   :  { %1608 = vmatmul.mubr.bf16.vlgmr.msra.gmra.mrb[8].mxu1 %v1901_v34 }
  0x2e   :  { %1612 = vmatpush3.bf16.msra.mxu1 %v2022_v18  ;;  %1627 = vmatprep.mubr.msk.bf16.mxu1 %vm1900_vm1, %v2594_v20 }
  0x2f   :  { %587 = vmatpush1.bf16.msra.mxu0 %v1975_v9  ;;  %1613 = vmatprep.subr.bf16.mxu1 %v2594_v20 }
  0x30   :  { %588 = vmatprep.subr.bf16.mxu0 %v1982_v10 }
  0x32   :  { %1614 = vmatpush3.bf16.msra.mxu1 %v2045_v23 }
  0x33   :  { %589 = vmatpush1.bf16.msra.mxu0 %v1993_v13  ;;  %1615 = vmatprep.subr.bf16.mxu1 %v2594_v20 }
  0x34   :  { %590 = vmatprep.subr.bf16.mxu0 %v2003_v15 }
  0x36   :  { %1616 = vmatpush3.bf16.msra.mxu1 %v2067_v26 }
  0x37   :  { %591 = vmatpush1.bf16.msra.mxu0 %v2009_v16  ;;  %1617 = vmatprep.subr.bf16.mxu1 %v2594_v20 }
  0x38   :  { %592 = vmatprep.subr.bf16.mxu0 %v2016_v17 }
  0x3a   :  { %1618 = vmatpush3.bf16.msra.mxu1 %v2090_v30 }
  0x3b   :  { %593 = vmatpush1.bf16.msra.mxu0 %v2031_v21  ;;  %1619 = vmatprep.subr.bf16.mxu1 %v2594_v20 }
  0x3c   :  { %594 = vmatprep.subr.bf16.mxu0 %v2037_v22 }
  0x3e   :  { %1620 = vmatpush3.bf16.msra.mxu1 %v2108_v32 }
  0x3f   :  { %595 = vmatpush1.bf16.msra.mxu0 %v2054_v24  ;;  %1621 = vmatprep.subr.bf16.mxu1 %v2594_v20 }
  0x40   :  { %596 = vmatprep.subr.bf16.mxu0 %v2061_v25 }
  0x42   :  { %1622 = vmatpush3.bf16.msra.mxu1 %v2116_v33 }
  0x43   :  { %597 = vmatpush1.bf16.msra.mxu0 %v2077_v28  ;;  %1623 = vmatprep.subr.bf16.mxu1 %v2594_v20 }
  0x44   :  { %598 = vmatprep.subr.bf16.mxu0 %v2084_v29 }
  0x46   :  { %1624 = vmatpush3.bf16.msra.mxu1 %v2126_v35 }
  0x47   :  { %599 = vmatpush1.bf16.msra.mxu0 %v2100_v31  ;;  %1625 = vmatprep.subr.bf16.mxu1 %v2594_v20 }
  0x48   :  { %704 = vmatprep.subr.bf16.mxu0 %v1956_v6 }
  0x4a   :  { %1626 = vmatpush3.bf16.msra.mxu1 %v2135_v36 }
  0x4b   :  { %1631 = vmatprep.subr.bf16.mxu1 %v2594_v20 }
  0xdd   :  { %v143_v37 = vpop.f32.mrb[0].mxu0 }
  0xde   :  { %v145_v38 = vpop.f32.mrb[1].mxu0 }
  0xdf   :  { %v2171_v39 = vpop.f32.mrb[2].mxu0 }
  0xe0   :  { %v2173_v40 = vpop.f32.mrb[3].mxu0  ;;  %v1585_v46 = vpop.f32.mrb[0].mxu1 }
  0xe1   :  { %v2186_v47 = vadd.f32 %v1585_v46, %v1478_v45  ;;  %v216_v48 = vpop.f32.mrb[1].mxu1 }
  0xe2   :  { %v1586_v49 = vpop.f32.mrb[2].mxu1 }
  0xe3   :  { %v2190_v51 = vadd.f32 %v1586_v49, %v1478_v45  ;;  %v219_v52 = vpop.f32.mrb[3].mxu1 }
  0xe4   :  { %v2194_v54 = vadd.f32 %v1478_v45, %v219_v52 }
  0xe5   :  { %v2175_v41 = vpop.f32.mrb[4].mxu0 }
  0xe6   :  { %v2177_v42 = vpop.f32.mrb[5].mxu0 }
  0xe7   :  { %v2179_v43 = vpop.f32.mrb[6].mxu0 }
  0xe8   :  { %v2181_v44 = vpop.f32.mrb[7].mxu0  ;;  %v1589_v58 = vpop.f32.mrb[4].mxu1 }
  0xe9   :  { %v2200_v59 = vadd.f32 %v1589_v58, %v1478_v45  ;;  %v232_v60 = vpop.f32.mrb[5].mxu1  ;;  %v532_v58 = vsub.s32 1, %v527_v61 }
  0xea   :  { %v2202_v62 = vadd.f32 %v1478_v45, %v232_v60  ;;  %v1590_v63 = vpop.f32.mrb[6].mxu1 }
  0xeb   :  { %2596 = vst [vmem:[#allocation4_spill] sm:$0xff] %v2200_v59  ;;  %v2206_v2 = vadd.f32 %v1590_v63, %v1478_v45  ;;  %v235_v3 = vpop.f32.mrb[7].mxu1  ;;  %v2222_v1 = vrot.slane %v303_v19, %v532_v58 }
  0xec   :  { %v2210_v5 = vadd.f32 %v1478_v45, %v235_v3 }
  0xed   :  { %v2188_v50 = vpop.f32.mrb[8].mxu0  ;;  %2597 = vst [vmem:[#allocation5_spill] sm:$0xff] %v2206_v2 }
  0xee   :  { %v2192_v53 = vpop.f32.mrb[9].mxu0 }
  0xef   :  { %v2196_v55 = vpop.f32.mrb[10].mxu0 }
  0xf0   :  { %v2198_v56 = vpop.f32.mrb[11].mxu0 }
  0xf5   :  { %v2204_v0 = vpop.f32.mrb[12].mxu0 }
  0xf6   :  { %v2208_v4 = vpop.f32.mrb[13].mxu0 }
  0xf7   :  { %2598 = vst [vmem:[#allocation6_spill] sm:$0xff] %v2208_v4  ;;  %v2212_v11 = vpop.f32.mrb[14].mxu0 }
  0xf8   :  { %2599 = vst [vmem:[#allocation7_spill] sm:$0xff] %v2212_v11  ;;  %v2214_v12 = vpop.f32.mrb[15].mxu0 }
  0xf9   :  { %2600 = vst [vmem:[#allocation8_spill] sm:$0xff] %v2214_v12 }
  0xfd   :  { %v476_v34 = vpop.f32.mrb[16].mxu0 }
  0xfe   :  { %v523_v46 = vadd.f32 %v476_v34, %v143_v37  ;;  %v478_v49 = vpop.f32.mrb[17].mxu0 }
  0xff   :  { %v524_v52 = vadd.f32 %v478_v49, %v145_v38  ;;  %v480_v57 = vpop.f32.mrb[18].mxu0  ;;  %v2228_v38 = vld [vmem:[%s2589_s4] ss:$0 sm:$0xff] }
 0x100   :  { %v536_v60 = vadd.f32 %v2219_v27, %v523_v46  ;;  %v481_v63 = vpop.f32.mrb[19].mxu0  ;;  %v517_v2 = vpop.f32.mrb[8].mxu1  ;;  %v556_v46 = vadd.f32 %v1478_v45, %v216_v48  ;;  %v2601_v45 = vmov 0.0   ;;  %v2602_v48 = vmov 0  }
 0x101   :  { %v537_v20 = vadd.f32 %v2222_v1, %v524_v52  ;;  %v1609_v12 = vpop.f32.mrb[9].mxu1  ;;  %v563_v61 = vadd.f32 %v2228_v38, %v517_v2 }
 0x102   :  { %v1476_v3 = vmul.f32 -1.442695, %v536_v60  ;;  %v520_v14 = vpop.f32.mrb[10].mxu1 }
 0x103   :  { %v1477_v11 = vmul.f32 -1.442695, %v537_v20  ;;  %v1610_v59 = vpop.f32.mrb[11].mxu1 }
 0x104   :  { %1799 = vpow2.f32 %v1476_v3 }
 0x105   :  { %1801 = vpow2.f32 %v1477_v11 }
 0x10e   :  { %v1800_v4 = vpop.eup %1799 }
 0x10f   :  { %v544_v37 = vadd.f32 1.0, %v1800_v4  ;;  %v1802_v19 = vpop.eup %1801 }
 0x110   :  { %v545_v52 = vadd.f32 1.0, %v1802_v19 }
 0x111   :  { %1803 = vrcp.f32 %v544_v37 }
 0x11b   :  { %v1804_v34 = vpop.eup %1803 }
 0x11c   :  { %v564_v49 = vmul.f32 %v1804_v34, %v563_v61 }
 0x11e   :  { %v565_v12 = vadd.f32 %v564_v49, %v556_v46 }
 0x120   :  { %1805 = vtanh.f32 %v565_v12 }
 0x121   :  { %1807 = vrcp.f32 %v545_v52 }
 0x12a   :  { %v1806_v20 = vpop.eup %1805 }
 0x12b   :  { %v567_v59 = vsub.f32 0.0, %v1806_v20  ;;  %v1808_v4 = vpop.eup %1807 }
 0x12d   :  { %v568_v11 = vmul.f32 %v1808_v4, %v567_v59 }
 0x12f   :  { %v2231_v57 = vadd.f32 %v1806_v20, %v568_v11 }
 0x131   :  { %576 = vst [vmem:[%s2590_s5] sm:$0xff] %v2231_v57  ;;  %v583_v2 = vpack.c.bf16 %v2231_v57, %v2231_v57 }
 0x133   :  { %617 = vmatmul.mubr.bf16.vlgmr.msra.gmra.mrb[20].mxu0 %v583_v2  ;;  %1628 = vmatmul.mubr.bf16.vlgmr.msra.gmra.mrb[12].mxu1 %v583_v2 }
 0x134   :  { %705 = vmatpush1.bf16.msra.mxu0 %v1962_v7  ;;  %1632 = vmatpush3.bf16.msra.mxu1 %v2022_v18 }
 0x135   :  { %706 = vmatprep.subr.bf16.mxu0 %v1968_v8  ;;  %1633 = vmatprep.subr.bf16.mxu1 %v2601_v45 }
 0x136   :  { %736 = vmatprep.mubr.bf16.mxu0 %v2602_v48  ;;  %1647 = vmatprep.mubr.msk.bf16.mxu1 %vm1900_vm1, %v2601_v45 }
 0x138   :  { %707 = vmatpush1.bf16.msra.mxu0 %v1975_v9  ;;  %1634 = vmatpush3.bf16.msra.mxu1 %v2045_v23 }
 0x139   :  { %708 = vmatprep.subr.bf16.mxu0 %v1982_v10  ;;  %1635 = vmatprep.subr.bf16.mxu1 %v2601_v45 }
 0x13c   :  { %709 = vmatpush1.bf16.msra.mxu0 %v1993_v13  ;;  %1636 = vmatpush3.bf16.msra.mxu1 %v2067_v26 }
 0x13d   :  { %710 = vmatprep.subr.bf16.mxu0 %v2003_v15  ;;  %1637 = vmatprep.subr.bf16.mxu1 %v2601_v45 }
 0x140   :  { %711 = vmatpush1.bf16.msra.mxu0 %v2009_v16  ;;  %1638 = vmatpush3.bf16.msra.mxu1 %v2090_v30 }
 0x141   :  { %712 = vmatprep.subr.bf16.mxu0 %v2016_v17  ;;  %1639 = vmatprep.subr.bf16.mxu1 %v2601_v45 }
 0x144   :  { %713 = vmatpush1.bf16.msra.mxu0 %v2031_v21  ;;  %1640 = vmatpush3.bf16.msra.mxu1 %v2108_v32 }
 0x145   :  { %714 = vmatprep.subr.bf16.mxu0 %v2037_v22  ;;  %1641 = vmatprep.subr.bf16.mxu1 %v2601_v45 }
 0x148   :  { %715 = vmatpush1.bf16.msra.mxu0 %v2054_v24  ;;  %1642 = vmatpush3.bf16.msra.mxu1 %v2116_v33 }
 0x149   :  { %716 = vmatprep.subr.bf16.mxu0 %v2061_v25  ;;  %1643 = vmatprep.subr.bf16.mxu1 %v2601_v45 }
 0x14c   :  { %717 = vmatpush1.bf16.msra.mxu0 %v2077_v28  ;;  %1644 = vmatpush3.bf16.msra.mxu1 %v2126_v35 }
 0x14d   :  { %718 = vmatprep.subr.bf16.mxu0 %v2084_v29  ;;  %1645 = vmatprep.subr.bf16.mxu1 %v2601_v45 }
 0x150   :  { %719 = vmatpush1.bf16.msra.mxu0 %v2100_v31  ;;  %1646 = vmatpush3.bf16.msra.mxu1 %v2135_v36 }
 0x151   :  { %824 = vmatprep.subr.bf16.mxu0 %v1956_v6  ;;  %1651 = vmatprep.subr.bf16.mxu1 %v2601_v45 }
 0x206   :  { %v618_v58 = vpop.f32.mrb[20].mxu0  ;;  %v659_v60 = vpop.f32.mrb[12].mxu1 }
 0x207   :  { %v665_v63 = vadd.f32 %v618_v58, %v2171_v39  ;;  %v620_v3 = vpop.f32.mrb[21].mxu0  ;;  %v1629_v14 = vpop.f32.mrb[13].mxu1  ;;  %v682_v11 = vadd.f32 %v2228_v38, %v659_v60 }
 0x208   :  { %v666_v37 = vadd.f32 %v620_v3, %v2173_v40  ;;  %v622_v61 = vpop.f32.mrb[22].mxu0  ;;  %v662_v19 = vpop.f32.mrb[14].mxu1 }
 0x209   :  { %v667_v34 = vadd.f32 %v665_v63, %v2219_v27  ;;  %v623_v46 = vpop.f32.mrb[23].mxu0  ;;  %v1630_v49 = vpop.f32.mrb[15].mxu1 }
 0x20a   :  { %v668_v12 = vadd.f32 %v666_v37, %v2222_v1 }
 0x20b   :  { %v1480_v52 = vmul.f32 -1.442695, %v667_v34 }
 0x20c   :  { %v1481_v20 = vmul.f32 -1.442695, %v668_v12 }
 0x20d   :  { %1809 = vpow2.f32 %v1480_v52 }
 0x20e   :  { %1811 = vpow2.f32 %v1481_v20 }
 0x217   :  { %v1810_v59 = vpop.eup %1809 }
 0x218   :  { %v675_v4 = vadd.f32 1.0, %v1810_v59  ;;  %v1812_v39 = vpop.eup %1811 }
 0x219   :  { %v676_v3 = vadd.f32 1.0, %v1812_v39 }
 0x21a   :  { %1813 = vrcp.f32 %v675_v4 }
 0x224   :  { %v1814_v2 = vpop.eup %1813 }
 0x225   :  { %v683_v40 = vmul.f32 %v1814_v2, %v682_v11 }
 0x227   :  { %v684_v58 = vadd.f32 %v683_v40, %v2194_v54 }
 0x229   :  { %1815 = vtanh.f32 %v684_v58 }
 0x22a   :  { %1817 = vrcp.f32 %v676_v3 }
 0x233   :  { %v1816_v63 = vpop.eup %1815 }
 0x234   :  { %v686_v14 = vsub.f32 %v2231_v57, %v1816_v63  ;;  %v1818_v61 = vpop.eup %1817 }
 0x236   :  { %v687_v37 = vmul.f32 %v1818_v61, %v686_v14 }
 0x238   :  { %v2281_v19 = vadd.f32 %v1816_v63, %v687_v37 }
 0x23a   :  { %1482 = vst [vmem:[%s2590_s5 + $0x8] sm:$0xff] %v2281_v19  ;;  %v703_v60 = vpack.c.bf16 %v2281_v19, %v2281_v19 }
 0x23c   :  { %737 = vmatmul.mubr.bf16.vlgmr.msra.gmra.mrb[24].mxu0 %v703_v60  ;;  %1648 = vmatmul.mubr.bf16.vlgmr.msra.gmra.mrb[16].mxu1 %v703_v60 }
 0x23d   :  { %825 = vmatpush1.bf16.msra.mxu0 %v1962_v7  ;;  %1652 = vmatpush3.bf16.msra.mxu1 %v2022_v18 }
 0x23e   :  { %826 = vmatprep.subr.bf16.mxu0 %v1968_v8  ;;  %1653 = vmatprep.subr.bf16.mxu1 %v2601_v45 }
 0x23f   :  { %856 = vmatprep.mubr.bf16.mxu0 %v2602_v48  ;;  %1667 = vmatprep.mubr.msk.bf16.mxu1 %vm1900_vm1, %v2601_v45 }
 0x241   :  { %827 = vmatpush1.bf16.msra.mxu0 %v1975_v9  ;;  %1654 = vmatpush3.bf16.msra.mxu1 %v2045_v23 }
 0x242   :  { %828 = vmatprep.subr.bf16.mxu0 %v1982_v10  ;;  %1655 = vmatprep.subr.bf16.mxu1 %v2601_v45 }
 0x245   :  { %829 = vmatpush1.bf16.msra.mxu0 %v1993_v13  ;;  %1656 = vmatpush3.bf16.msra.mxu1 %v2067_v26 }
 0x246   :  { %830 = vmatprep.subr.bf16.mxu0 %v2003_v15  ;;  %1657 = vmatprep.subr.bf16.mxu1 %v2601_v45 }
 0x249   :  { %831 = vmatpush1.bf16.msra.mxu0 %v2009_v16  ;;  %1658 = vmatpush3.bf16.msra.mxu1 %v2090_v30 }
 0x24a   :  { %832 = vmatprep.subr.bf16.mxu0 %v2016_v17  ;;  %1659 = vmatprep.subr.bf16.mxu1 %v2601_v45 }
 0x24d   :  { %833 = vmatpush1.bf16.msra.mxu0 %v2031_v21  ;;  %1660 = vmatpush3.bf16.msra.mxu1 %v2108_v32 }
 0x24e   :  { %834 = vmatprep.subr.bf16.mxu0 %v2037_v22  ;;  %1661 = vmatprep.subr.bf16.mxu1 %v2601_v45 }
 0x251   :  { %835 = vmatpush1.bf16.msra.mxu0 %v2054_v24  ;;  %1662 = vmatpush3.bf16.msra.mxu1 %v2116_v33 }
 0x252   :  { %836 = vmatprep.subr.bf16.mxu0 %v2061_v25  ;;  %1663 = vmatprep.subr.bf16.mxu1 %v2601_v45 }
 0x255   :  { %837 = vmatpush1.bf16.msra.mxu0 %v2077_v28  ;;  %1664 = vmatpush3.bf16.msra.mxu1 %v2126_v35 }
 0x256   :  { %838 = vmatprep.subr.bf16.mxu0 %v2084_v29  ;;  %1665 = vmatprep.subr.bf16.mxu1 %v2601_v45 }
 0x259   :  { %839 = vmatpush1.bf16.msra.mxu0 %v2100_v31  ;;  %1666 = vmatpush3.bf16.msra.mxu1 %v2135_v36 }
 0x25a   :  { %944 = vmatprep.subr.bf16.mxu0 %v1956_v6  ;;  %1671 = vmatprep.subr.bf16.mxu1 %v2601_v45 }
 0x30f   :  { %v738_v54 = vpop.f32.mrb[24].mxu0  ;;  %v779_v57 = vpop.f32.mrb[16].mxu1 }
 0x310   :  { %v785_v34 = vadd.f32 %v738_v54, %v2175_v41  ;;  %v740_v46 = vpop.f32.mrb[25].mxu0  ;;  %v1649_v49 = vpop.f32.mrb[17].mxu1  ;;  %v802_v63 = vadd.f32 %v2228_v38, %v779_v57 }
 0x311   :  { %v786_v52 = vadd.f32 %v740_v46, %v2177_v42  ;;  %v742_v12 = vpop.f32.mrb[26].mxu0  ;;  %v782_v20 = vpop.f32.mrb[18].mxu1 }
 0x312   :  { %v787_v59 = vadd.f32 %v785_v34, %v2219_v27  ;;  %v743_v4 = vpop.f32.mrb[27].mxu0  ;;  %v1650_v39 = vpop.f32.mrb[19].mxu1 }
 0x313   :  { %v788_v2 = vadd.f32 %v786_v52, %v2222_v1 }
 0x314   :  { %v1483_v11 = vmul.f32 -1.442695, %v787_v59 }
 0x315   :  { %v1484_v40 = vmul.f32 -1.442695, %v788_v2 }
 0x316   :  { %1819 = vpow2.f32 %v1483_v11 }
 0x317   :  { %1821 = vpow2.f32 %v1484_v40 }
 0x320   :  { %v1820_v58 = vpop.eup %1819 }
 0x321   :  { %v795_v3 = vadd.f32 1.0, %v1820_v58  ;;  %v1822_v41 = vpop.eup %1821 }
 0x322   :  { %v796_v37 = vadd.f32 1.0, %v1822_v41 }
 0x323   :  { %1823 = vrcp.f32 %v795_v3 }
 0x32d   :  { %v1824_v14 = vpop.eup %1823 }
 0x32e   :  { %v803_v42 = vmul.f32 %v1824_v14, %v802_v63 }
 0x330   :  { %v804_v61 = vadd.f32 %v803_v42, %v2186_v47 }
 0x332   :  { %1825 = vtanh.f32 %v804_v61 }
 0x333   :  { %1827 = vrcp.f32 %v796_v37 }
 0x33c   :  { %v1826_v60 = vpop.eup %1825 }
 0x33d   :  { %v806_v54 = vsub.f32 %v2281_v19, %v1826_v60  ;;  %v1828_v34 = vpop.eup %1827 }
 0x33f   :  { %v807_v46 = vmul.f32 %v1828_v34, %v806_v54 }
 0x341   :  { %v2331_v49 = vadd.f32 %v1826_v60, %v807_v46 }
 0x343   :  { %1485 = vst [vmem:[%s2590_s5 + $0x10] sm:$0xff] %v2331_v49  ;;  %v823_v57 = vpack.c.bf16 %v2331_v49, %v2331_v49 }
 0x345   :  { %857 = vmatmul.mubr.bf16.vlgmr.msra.gmra.mrb[28].mxu0 %v823_v57  ;;  %1668 = vmatmul.mubr.bf16.vlgmr.msra.gmra.mrb[20].mxu1 %v823_v57 }
 0x346   :  { %945 = vmatpush1.bf16.msra.mxu0 %v1962_v7  ;;  %1672 = vmatpush3.bf16.msra.mxu1 %v2022_v18 }
 0x347   :  { %946 = vmatprep.subr.bf16.mxu0 %v1968_v8  ;;  %1673 = vmatprep.subr.bf16.mxu1 %v2601_v45 }
 0x348   :  { %976 = vmatprep.mubr.bf16.mxu0 %v2602_v48  ;;  %1687 = vmatprep.mubr.msk.bf16.mxu1 %vm1900_vm1, %v2601_v45 }
 0x34a   :  { %947 = vmatpush1.bf16.msra.mxu0 %v1975_v9  ;;  %1674 = vmatpush3.bf16.msra.mxu1 %v2045_v23 }
 0x34b   :  { %948 = vmatprep.subr.bf16.mxu0 %v1982_v10  ;;  %1675 = vmatprep.subr.bf16.mxu1 %v2601_v45 }
 0x34e   :  { %949 = vmatpush1.bf16.msra.mxu0 %v1993_v13  ;;  %1676 = vmatpush3.bf16.msra.mxu1 %v2067_v26 }
 0x34f   :  { %950 = vmatprep.subr.bf16.mxu0 %v2003_v15  ;;  %1677 = vmatprep.subr.bf16.mxu1 %v2601_v45 }
 0x352   :  { %951 = vmatpush1.bf16.msra.mxu0 %v2009_v16  ;;  %1678 = vmatpush3.bf16.msra.mxu1 %v2090_v30 }
 0x353   :  { %952 = vmatprep.subr.bf16.mxu0 %v2016_v17  ;;  %1679 = vmatprep.subr.bf16.mxu1 %v2601_v45 }
 0x356   :  { %953 = vmatpush1.bf16.msra.mxu0 %v2031_v21  ;;  %1680 = vmatpush3.bf16.msra.mxu1 %v2108_v32 }
 0x357   :  { %954 = vmatprep.subr.bf16.mxu0 %v2037_v22  ;;  %1681 = vmatprep.subr.bf16.mxu1 %v2601_v45 }
 0x35a   :  { %955 = vmatpush1.bf16.msra.mxu0 %v2054_v24  ;;  %1682 = vmatpush3.bf16.msra.mxu1 %v2116_v33 }
 0x35b   :  { %956 = vmatprep.subr.bf16.mxu0 %v2061_v25  ;;  %1683 = vmatprep.subr.bf16.mxu1 %v2601_v45 }
 0x35e   :  { %957 = vmatpush1.bf16.msra.mxu0 %v2077_v28  ;;  %1684 = vmatpush3.bf16.msra.mxu1 %v2126_v35 }
 0x35f   :  { %958 = vmatprep.subr.bf16.mxu0 %v2084_v29  ;;  %1685 = vmatprep.subr.bf16.mxu1 %v2601_v45 }
 0x362   :  { %959 = vmatpush1.bf16.msra.mxu0 %v2100_v31  ;;  %1686 = vmatpush3.bf16.msra.mxu1 %v2135_v36 }
 0x363   :  { %1064 = vmatprep.subr.bf16.mxu0 %v1956_v6  ;;  %1691 = vmatprep.subr.bf16.mxu1 %v2601_v45 }
 0x418   :  { %v858_v47 = vpop.f32.mrb[28].mxu0  ;;  %v899_v19 = vpop.f32.mrb[20].mxu1 }
 0x419   :  { %v905_v52 = vadd.f32 %v858_v47, %v2179_v43  ;;  %v860_v12 = vpop.f32.mrb[29].mxu0  ;;  %v1669_v20 = vpop.f32.mrb[21].mxu1  ;;  %v922_v42 = vadd.f32 %v2228_v38, %v899_v19 }
 0x41a   :  { %v906_v59 = vadd.f32 %v860_v12, %v2181_v44  ;;  %v862_v4 = vpop.f32.mrb[30].mxu0  ;;  %v902_v39 = vpop.f32.mrb[22].mxu1 }
 0x41b   :  { %v907_v11 = vadd.f32 %v905_v52, %v2219_v27  ;;  %v863_v2 = vpop.f32.mrb[31].mxu0  ;;  %v1670_v40 = vpop.f32.mrb[23].mxu1 }
 0x41c   :  { %v908_v3 = vadd.f32 %v906_v59, %v2222_v1 }
 0x41d   :  { %v1486_v58 = vmul.f32 -1.442695, %v907_v11 }
 0x41e   :  { %v1487_v41 = vmul.f32 -1.442695, %v908_v3 }
 0x41f   :  { %1829 = vpow2.f32 %v1486_v58 }
 0x420   :  { %1831 = vpow2.f32 %v1487_v41 }
 0x429   :  { %v1830_v63 = vpop.eup %1829 }
 0x42a   :  { %v915_v14 = vadd.f32 1.0, %v1830_v63  ;;  %v1832_v43 = vpop.eup %1831 }
 0x42b   :  { %v916_v60 = vadd.f32 1.0, %v1832_v43 }
 0x42c   :  { %1833 = vrcp.f32 %v915_v14 }
 0x436   :  { %v1834_v61 = vpop.eup %1833 }
 0x437   :  { %v923_v44 = vmul.f32 %v1834_v61, %v922_v42 }
 0x439   :  { %v924_v37 = vadd.f32 %v923_v44, %v2190_v51 }
 0x43b   :  { %1835 = vtanh.f32 %v924_v37 }
 0x43c   :  { %1837 = vrcp.f32 %v916_v60 }
 0x445   :  { %v1836_v54 = vpop.eup %1835 }
 0x446   :  { %v926_v34 = vsub.f32 %v2331_v49, %v1836_v54  ;;  %v1838_v46 = vpop.eup %1837 }
 0x448   :  { %v927_v57 = vmul.f32 %v1838_v46, %v926_v34 }
 0x44a   :  { %v2381_v47 = vadd.f32 %v1836_v54, %v927_v57 }
 0x44c   :  { %1488 = vst [vmem:[%s2590_s5 + $0x18] sm:$0xff] %v2381_v47  ;;  %v943_v19 = vpack.c.bf16 %v2381_v47, %v2381_v47 }
 0x44e   :  { %977 = vmatmul.mubr.bf16.vlgmr.msra.gmra.mrb[32].mxu0 %v943_v19  ;;  %1688 = vmatmul.mubr.bf16.vlgmr.msra.gmra.mrb[24].mxu1 %v943_v19 }
 0x44f   :  { %1065 = vmatpush1.bf16.msra.mxu0 %v1962_v7  ;;  %1692 = vmatpush3.bf16.msra.mxu1 %v2022_v18 }
 0x450   :  { %1066 = vmatprep.subr.bf16.mxu0 %v1968_v8  ;;  %1693 = vmatprep.subr.bf16.mxu1 %v2601_v45 }
 0x451   :  { %1096 = vmatprep.mubr.bf16.mxu0 %v2602_v48  ;;  %1707 = vmatprep.mubr.msk.bf16.mxu1 %vm1900_vm1, %v2601_v45 }
 0x453   :  { %1067 = vmatpush1.bf16.msra.mxu0 %v1975_v9  ;;  %1694 = vmatpush3.bf16.msra.mxu1 %v2045_v23 }
 0x454   :  { %1068 = vmatprep.subr.bf16.mxu0 %v1982_v10  ;;  %1695 = vmatprep.subr.bf16.mxu1 %v2601_v45 }
 0x457   :  { %1069 = vmatpush1.bf16.msra.mxu0 %v1993_v13  ;;  %1696 = vmatpush3.bf16.msra.mxu1 %v2067_v26 }
 0x458   :  { %1070 = vmatprep.subr.bf16.mxu0 %v2003_v15  ;;  %1697 = vmatprep.subr.bf16.mxu1 %v2601_v45 }
 0x45b   :  { %1071 = vmatpush1.bf16.msra.mxu0 %v2009_v16  ;;  %1698 = vmatpush3.bf16.msra.mxu1 %v2090_v30 }
 0x45c   :  { %1072 = vmatprep.subr.bf16.mxu0 %v2016_v17  ;;  %1699 = vmatprep.subr.bf16.mxu1 %v2601_v45 }
 0x45f   :  { %1073 = vmatpush1.bf16.msra.mxu0 %v2031_v21  ;;  %1700 = vmatpush3.bf16.msra.mxu1 %v2108_v32 }
 0x460   :  { %1074 = vmatprep.subr.bf16.mxu0 %v2037_v22  ;;  %1701 = vmatprep.subr.bf16.mxu1 %v2601_v45 }
 0x463   :  { %1075 = vmatpush1.bf16.msra.mxu0 %v2054_v24  ;;  %1702 = vmatpush3.bf16.msra.mxu1 %v2116_v33 }
 0x464   :  { %1076 = vmatprep.subr.bf16.mxu0 %v2061_v25  ;;  %1703 = vmatprep.subr.bf16.mxu1 %v2601_v45 }
 0x467   :  { %1077 = vmatpush1.bf16.msra.mxu0 %v2077_v28  ;;  %1704 = vmatpush3.bf16.msra.mxu1 %v2126_v35 }
 0x468   :  { %1078 = vmatprep.subr.bf16.mxu0 %v2084_v29  ;;  %1705 = vmatprep.subr.bf16.mxu1 %v2601_v45 }
 0x46b   :  { %1079 = vmatpush1.bf16.msra.mxu0 %v2100_v31  ;;  %1706 = vmatpush3.bf16.msra.mxu1 %v2135_v36 }
 0x46c   :  { %1184 = vmatprep.subr.bf16.mxu0 %v1956_v6  ;;  %1711 = vmatprep.subr.bf16.mxu1 %v2601_v45 }
 0x521   :  { %v978_v7 = vpop.f32.mrb[32].mxu0  ;;  %v1019_v51 = vpop.f32.mrb[24].mxu1 }
 0x522   :  { %v1025_v49 = vadd.f32 %v978_v7, %v2188_v50  ;;  %v980_v52 = vpop.f32.mrb[33].mxu0  ;;  %v1689_v12 = vpop.f32.mrb[25].mxu1  ;;  %v1042_v63 = vadd.f32 %v2228_v38, %v1019_v51 }
 0x523   :  { %v1026_v20 = vadd.f32 %v980_v52, %v2192_v53  ;;  %v982_v59 = vpop.f32.mrb[34].mxu0  ;;  %v1022_v4 = vpop.f32.mrb[26].mxu1 }
 0x524   :  { %v1027_v39 = vadd.f32 %v1025_v49, %v2219_v27  ;;  %v983_v11 = vpop.f32.mrb[35].mxu0  ;;  %v1690_v2 = vpop.f32.mrb[27].mxu1  ;;  %v1882_v59 = vld [vmem:[%s2587_s2 + $0x1c] ss:$12 sps:$4 sm:$0xff]   ;;  %v1883_v4 = vld [vmem:[%s2587_s2 + $0x18] ss:$12 sps:$4 sm:$0xff]  }
 0x525   :  { %v1028_v6 = vadd.f32 %v1026_v20, %v2222_v1  ;;  %v1885_v11 = vld [vmem:[%s2587_s2 + $0x34] ss:$12 sps:$4 sm:$0xff]   ;;  %v1887_v2 = vld [vmem:[%s2587_s2 + $0x38] ss:$12 sps:$4 sm:$0xff]  }
 0x526   :  { %v1489_v40 = vmul.f32 -1.442695, %v1027_v39  ;;  %v1884_v39 = vld [vmem:[%s2587_s2 + $0x20] ss:$12 sps:$4 sm:$0xff]  }
 0x527   :  { %v1490_v58 = vmul.f32 -1.442695, %v1028_v6  ;;  %v1889_v6 = vld [vmem:[%s2587_s2 + $0x48] ss:$12 sps:$4 sm:$0xff]  }
 0x528   :  { %1839 = vpow2.f32 %v1489_v40  ;;  %v1888_v40 = vld [vmem:[%s2587_s2 + $0x4c] ss:$12 sps:$4 sm:$0xff]  }
 0x529   :  { %1841 = vpow2.f32 %v1490_v58  ;;  %v1890_v58 = vld [vmem:[%s2587_s2 + $0x64] ss:$12 sps:$4 sm:$0xff]  }
 0x532   :  { %v1840_v3 = vpop.eup %1839 }
 0x533   :  { %v1035_v41 = vadd.f32 1.0, %v1840_v3  ;;  %v1842_v50 = vpop.eup %1841  ;;  %v1891_v3 = vld [vmem:[%s2587_s2 + $0x60] ss:$12 sps:$4 sm:$0xff]  }
 0x534   :  { %v1036_v42 = vadd.f32 1.0, %v1842_v50  ;;  %v1894_v50 = vld [vmem:[%s2587_s2 + $0x94] ss:$12 sps:$4 sm:$0xff]  }
 0x535   :  { %1843 = vrcp.f32 %v1035_v41  ;;  %v1892_v41 = vld [vmem:[%s2587_s2 + $0x7c] ss:$12 sps:$4 sm:$0xff]  }
 0x53f   :  { %v1844_v14 = vpop.eup %1843 }
 0x540   :  { %v1043_v53 = vmul.f32 %v1844_v14, %v1042_v63  ;;  %v1896_v63 = vld [vmem:[%s2587_s2 + $0xac] ss:$12 sps:$4 sm:$0xff]  }
 0x542   :  { %v1044_v43 = vadd.f32 %v1043_v53, %v2202_v62  ;;  %v2442_v62 = vld [vmem:[%s2587_s2] ss:$12 sps:$4 sm:$0xff]  }
 0x544   :  { %1845 = vtanh.f32 %v1044_v43 }
 0x545   :  { %1847 = vrcp.f32 %v1036_v42 }
 0x54e   :  { %v1846_v61 = vpop.eup %1845 }
 0x54f   :  { %v1046_v44 = vsub.f32 %v2381_v47, %v1846_v61  ;;  %v1848_v37 = vpop.eup %1847 }
 0x551   :  { %v1047_v60 = vmul.f32 %v1848_v37, %v1046_v44 }
 0x553   :  { %v2431_v54 = vadd.f32 %v1846_v61, %v1047_v60  ;;  %v2603_v61 = vld [vmem:[#allocation6_spill] sm:$0xff] }
 0x555   :  { %1491 = vst [vmem:[%s2590_s5 + $0x20] sm:$0xff] %v2431_v54  ;;  %v1063_v34 = vpack.c.bf16 %v2431_v54, %v2431_v54 }
 0x557   :  { %1097 = vmatmul.mubr.bf16.vlgmr.msra.gmra.mrb[36].mxu0 %v1063_v34  ;;  %1708 = vmatmul.mubr.bf16.vlgmr.msra.gmra.mrb[28].mxu1 %v1063_v34 }
 0x558   :  { %1185 = vmatpush1.bf16.msra.mxu0 %v2442_v62  ;;  %1712 = vmatpush3.bf16.msra.mxu1 %v2022_v18 }
 0x559   :  { %1186 = vmatprep.subr.bf16.mxu0 %v1968_v8  ;;  %1713 = vmatprep.subr.bf16.mxu1 %v2601_v45  ;;  %v1880_v8 = vld [vmem:[%s2587_s2 + $0x4] ss:$12 sps:$4 sm:$0xff]  }
 0x55a   :  { %1216 = vmatprep.mubr.bf16.mxu0 %v2602_v48  ;;  %1727 = vmatprep.mubr.msk.bf16.mxu1 %vm1900_vm1, %v2601_v45 }
 0x55c   :  { %1187 = vmatpush1.bf16.msra.mxu0 %v1975_v9  ;;  %1714 = vmatpush3.bf16.msra.mxu1 %v2045_v23 }
 0x55d   :  { %1188 = vmatprep.subr.bf16.mxu0 %v1982_v10  ;;  %1715 = vmatprep.subr.bf16.mxu1 %v2601_v45 }
 0x560   :  { %1189 = vmatpush1.bf16.msra.mxu0 %v1993_v13  ;;  %1716 = vmatpush3.bf16.msra.mxu1 %v2067_v26 }
 0x561   :  { %1190 = vmatprep.subr.bf16.mxu0 %v2003_v15  ;;  %1717 = vmatprep.subr.bf16.mxu1 %v2601_v45 }
 0x564   :  { %1191 = vmatpush1.bf16.msra.mxu0 %v2009_v16  ;;  %1718 = vmatpush3.bf16.msra.mxu1 %v2090_v30 }
 0x565   :  { %1192 = vmatprep.subr.bf16.mxu0 %v2016_v17  ;;  %1719 = vmatprep.subr.bf16.mxu1 %v2601_v45 }
 0x568   :  { %1193 = vmatpush1.bf16.msra.mxu0 %v2031_v21  ;;  %1720 = vmatpush3.bf16.msra.mxu1 %v2108_v32 }
 0x569   :  { %1194 = vmatprep.subr.bf16.mxu0 %v2037_v22  ;;  %1721 = vmatprep.subr.bf16.mxu1 %v2601_v45 }
 0x56c   :  { %1195 = vmatpush1.bf16.msra.mxu0 %v2054_v24  ;;  %1722 = vmatpush3.bf16.msra.mxu1 %v2116_v33 }
 0x56d   :  { %1196 = vmatprep.subr.bf16.mxu0 %v2061_v25  ;;  %1723 = vmatprep.subr.bf16.mxu1 %v2601_v45 }
 0x570   :  { %1197 = vmatpush1.bf16.msra.mxu0 %v2077_v28  ;;  %1724 = vmatpush3.bf16.msra.mxu1 %v2126_v35 }
 0x571   :  { %1198 = vmatprep.subr.bf16.mxu0 %v2084_v29  ;;  %1725 = vmatprep.subr.bf16.mxu1 %v2601_v45 }
 0x574   :  { %1199 = vmatpush1.bf16.msra.mxu0 %v2100_v31  ;;  %1726 = vmatpush3.bf16.msra.mxu1 %v2135_v36 }
 0x575   :  { %1304 = vmatprep.subr.bf16.mxu0 %v1880_v8  ;;  %1731 = vmatprep.subr.bf16.mxu1 %v2601_v45 }
 0x62a   :  { %v1098_v9 = vpop.f32.mrb[36].mxu0  ;;  %v1139_v10 = vpop.f32.mrb[28].mxu1 }
 0x62b   :  { %v1145_v13 = vadd.f32 %v1098_v9, %v2196_v55  ;;  %v1100_v15 = vpop.f32.mrb[37].mxu0  ;;  %v1709_v16 = vpop.f32.mrb[29].mxu1  ;;  %v1162_v46 = vadd.f32 %v2228_v38, %v1139_v10 }
 0x62c   :  { %v1146_v17 = vadd.f32 %v1100_v15, %v2198_v56  ;;  %v1102_v18 = vpop.f32.mrb[38].mxu0  ;;  %v1142_v21 = vpop.f32.mrb[30].mxu1 }
 0x62d   :  { %v1147_v22 = vadd.f32 %v1145_v13, %v2219_v27  ;;  %v1103_v23 = vpop.f32.mrb[39].mxu0  ;;  %v1710_v24 = vpop.f32.mrb[31].mxu1 }
 0x62e   :  { %v1148_v26 = vadd.f32 %v1146_v17, %v2222_v1  ;;  %v2604_v17 = vld [vmem:[#allocation4_spill] sm:$0xff] }
 0x62f   :  { %v1492_v25 = vmul.f32 -1.442695, %v1147_v22 }
 0x630   :  { %v1493_v28 = vmul.f32 -1.442695, %v1148_v26 }
 0x631   :  { %1849 = vpow2.f32 %v1492_v25 }
 0x632   :  { %1851 = vpow2.f32 %v1493_v28 }
 0x63b   :  { %v1850_v29 = vpop.eup %1849 }
 0x63c   :  { %v1155_v31 = vadd.f32 1.0, %v1850_v29  ;;  %v1852_v55 = vpop.eup %1851 }
 0x63d   :  { %v1156_v19 = vadd.f32 1.0, %v1852_v55  ;;  %v2605_v55 = vld [vmem:[#allocation7_spill] sm:$0xff] }
 0x63e   :  { %1853 = vrcp.f32 %v1155_v31 }
 0x648   :  { %v1854_v57 = vpop.eup %1853 }
 0x649   :  { %v1163_v56 = vmul.f32 %v1854_v57, %v1162_v46 }
 0x64b   :  { %v1164_v47 = vadd.f32 %v1163_v56, %v2210_v5  ;;  %v1881_v5 = vld [vmem:[%s2587_s2 + $0x8] ss:$12 sps:$4 sm:$0xff]  }
 0x64d   :  { %1855 = vtanh.f32 %v1164_v47  ;;  %v2606_v47 = vld [vmem:[#allocation8_spill] sm:$0xff] }
 0x64e   :  { %1857 = vrcp.f32 %v1156_v19 }
 0x657   :  { %v1856_v7 = vpop.eup %1855 }
 0x658   :  { %v1166_v51 = vsub.f32 %v2431_v54, %v1856_v7  ;;  %v1858_v49 = vpop.eup %1857 }
 0x65a   :  { %v1167_v52 = vmul.f32 %v1858_v49, %v1166_v51 }
 0x65c   :  { %v2488_v12 = vadd.f32 %v1856_v7, %v1167_v52 }
 0x65e   :  { %1494 = vst [vmem:[%s2590_s5 + $0x28] sm:$0xff] %v2488_v12  ;;  %v1183_v20 = vpack.c.bf16 %v2488_v12, %v2488_v12 }
 0x660   :  { %1217 = vmatmul.mubr.bf16.vlgmr.msra.gmra.mrb[40].mxu0 %v1183_v20  ;;  %1728 = vmatmul.mubr.bf16.vlgmr.msra.gmra.mrb[32].mxu1 %v1183_v20 }
 0x661   :  { %1305 = vmatpush1.bf16.msra.mxu0 %v2442_v62  ;;  %1732 = vmatpush3.bf16.msra.mxu1 %v1881_v5 }
 0x662   :  { %1306 = vmatprep.subr.bf16.mxu0 %v1882_v59  ;;  %1733 = vmatprep.subr.bf16.mxu1 %v2601_v45 }
 0x663   :  { %1336 = vmatprep.mubr.bf16.mxu0 %v2602_v48  ;;  %1747 = vmatprep.mubr.msk.bf16.mxu1 %vm1900_vm1, %v2601_v45  ;;  %v1886_v48 = vld [vmem:[%s2587_s2 + $0x30] ss:$12 sps:$4 sm:$0xff]  }
 0x665   :  { %1307 = vmatpush1.bf16.msra.mxu0 %v1883_v4  ;;  %1734 = vmatpush3.bf16.msra.mxu1 %v1884_v39 }
 0x666   :  { %1308 = vmatprep.subr.bf16.mxu0 %v1885_v11  ;;  %1735 = vmatprep.subr.bf16.mxu1 %v2601_v45 }
 0x669   :  { %1309 = vmatpush1.bf16.msra.mxu0 %v1886_v48  ;;  %1736 = vmatpush3.bf16.msra.mxu1 %v1887_v2 }
 0x66a   :  { %1310 = vmatprep.subr.bf16.mxu0 %v1888_v40  ;;  %1737 = vmatprep.subr.bf16.mxu1 %v2601_v45 }
 0x66d   :  { %1311 = vmatpush1.bf16.msra.mxu0 %v1889_v6  ;;  %1738 = vmatpush3.bf16.msra.mxu1 %v2090_v30  ;;  %v1893_v30 = vld [vmem:[%s2587_s2 + $0x78] ss:$12 sps:$4 sm:$0xff]   ;;  %v2607_v6 = vld [vmem:[#allocation5_spill] sm:$0xff] }
 0x66e   :  { %1312 = vmatprep.subr.bf16.mxu0 %v1890_v58  ;;  %1739 = vmatprep.subr.bf16.mxu1 %v2601_v45 }
 0x671   :  { %1313 = vmatpush1.bf16.msra.mxu0 %v1891_v3  ;;  %1740 = vmatpush3.bf16.msra.mxu1 %v2108_v32  ;;  %v1895_v32 = vld [vmem:[%s2587_s2 + $0x90] ss:$12 sps:$4 sm:$0xff]  }
 0x672   :  { %1314 = vmatprep.subr.bf16.mxu0 %v1892_v41  ;;  %1741 = vmatprep.subr.bf16.mxu1 %v2601_v45 }
 0x675   :  { %1315 = vmatpush1.bf16.msra.mxu0 %v1893_v30  ;;  %1742 = vmatpush3.bf16.msra.mxu1 %v2116_v33  ;;  %v1897_v33 = vld [vmem:[%s2587_s2 + $0xa8] ss:$12 sps:$4 sm:$0xff]  }
 0x676   :  { %1316 = vmatprep.subr.bf16.mxu0 %v1894_v50  ;;  %1743 = vmatprep.subr.bf16.mxu1 %v2601_v45 }
 0x679   :  { %1317 = vmatpush1.bf16.msra.mxu0 %v1895_v32  ;;  %1744 = vmatpush3.bf16.msra.mxu1 %v2126_v35 }
 0x67a   :  { %1318 = vmatprep.subr.bf16.mxu0 %v1896_v63  ;;  %1745 = vmatprep.subr.bf16.mxu1 %v2601_v45 }
 0x67d   :  { %1319 = vmatpush1.bf16.msra.mxu0 %v1897_v33  ;;  %1746 = vmatpush3.bf16.msra.mxu1 %v2135_v36 }
 0x733   :  { %v1218_v14 = vpop.f32.mrb[40].mxu0  ;;  %v1259_v53 = vpop.f32.mrb[32].mxu1 }
 0x734   :  { %v1265_v43 = vadd.f32 %v1218_v14, %v2204_v0  ;;  %v1220_v42 = vpop.f32.mrb[41].mxu0  ;;  %v1729_v35 = vpop.f32.mrb[33].mxu1  ;;  %v1282_v13 = vadd.f32 %v2228_v38, %v1259_v53 }
 0x735   :  { %v1266_v44 = vadd.f32 %v1220_v42, %v2603_v61  ;;  %v1222_v37 = vpop.f32.mrb[42].mxu0  ;;  %v1262_v60 = vpop.f32.mrb[34].mxu1 }
 0x736   :  { %v1267_v54 = vadd.f32 %v1265_v43, %v2219_v27  ;;  %v1223_v45 = vpop.f32.mrb[43].mxu0  ;;  %v1730_v34 = vpop.f32.mrb[35].mxu1 }
 0x737   :  { %v1268_v8 = vadd.f32 %v1266_v44, %v2222_v1 }
 0x738   :  { %v1495_v62 = vmul.f32 -1.442695, %v1267_v54 }
 0x739   :  { %v1496_v9 = vmul.f32 -1.442695, %v1268_v8 }
 0x73a   :  { %1859 = vpow2.f32 %v1495_v62 }
 0x73b   :  { %1861 = vpow2.f32 %v1496_v9 }
 0x744   :  { %v1860_v36 = vpop.eup %1859 }
 0x745   :  { %v1275_v10 = vadd.f32 1.0, %v1860_v36  ;;  %v1862_v0 = vpop.eup %1861 }
 0x746   :  { %v1276_v21 = vadd.f32 1.0, %v1862_v0 }
 0x747   :  { %1863 = vrcp.f32 %v1275_v10 }
 0x751   :  { %v1864_v15 = vpop.eup %1863 }
 0x752   :  { %v1283_v16 = vmul.f32 %v1864_v15, %v1282_v13 }
 0x754   :  { %v1284_v18 = vadd.f32 %v1283_v16, %v2604_v17 }
 0x756   :  { %1865 = vtanh.f32 %v1284_v18 }
 0x757   :  { %1867 = vrcp.f32 %v1276_v21 }
 0x760   :  { %v1866_v22 = vpop.eup %1865 }
 0x761   :  { %v1286_v23 = vsub.f32 %v2488_v12, %v1866_v22  ;;  %v1868_v24 = vpop.eup %1867 }
 0x763   :  { %v1287_v25 = vmul.f32 %v1868_v24, %v1286_v23 }
 0x765   :  { %v1288_v26 = vadd.f32 %v1866_v22, %v1287_v25 }
 0x767   :  { %1497 = vst [vmem:[%s2590_s5 + $0x30] sm:$0xff] %v1288_v26  ;;  %v1303_v28 = vpack.c.bf16 %v1288_v26, %v1288_v26 }
 0x769   :  { %1337 = vmatmul.mubr.bf16.vlgmr.msra.gmra.mrb[44].mxu0 %v1303_v28  ;;  %1748 = vmatmul.mubr.bf16.vlgmr.msra.gmra.mrb[36].mxu1 %v1303_v28 }
 0x83c   :  { %v1338_v29 = vpop.f32.mrb[44].mxu0  ;;  %v1379_v31 = vpop.f32.mrb[36].mxu1 }
 0x83d   :  { %v1385_v46 = vadd.f32 %v1338_v29, %v2605_v55  ;;  %v1340_v57 = vpop.f32.mrb[45].mxu0  ;;  %v1749_v56 = vpop.f32.mrb[37].mxu1  ;;  %v1402_v48 = vadd.f32 %v2228_v38, %v1379_v31 }
 0x83e   :  { %v1386_v19 = vadd.f32 %v1340_v57, %v2606_v47  ;;  %v1342_v7 = vpop.f32.mrb[46].mxu0  ;;  %v1382_v51 = vpop.f32.mrb[38].mxu1 }
 0x83f   :  { %v1387_v49 = vadd.f32 %v1385_v46, %v2219_v27  ;;  %v1343_v52 = vpop.f32.mrb[47].mxu0  ;;  %v1750_v12 = vpop.f32.mrb[39].mxu1 }
 0x840   :  { %v1388_v5 = vadd.f32 %v1386_v19, %v2222_v1 }
 0x841   :  { %v1498_v20 = vmul.f32 -1.442695, %v1387_v49 }
 0x842   :  { %v1499_v59 = vmul.f32 -1.442695, %v1388_v5 }
 0x843   :  { %1869 = vpow2.f32 %v1498_v20 }
 0x844   :  { %1871 = vpow2.f32 %v1499_v59 }
 0x84d   :  { %v1870_v4 = vpop.eup %1869 }
 0x84e   :  { %v1395_v39 = vadd.f32 1.0, %v1870_v4  ;;  %v1872_v11 = vpop.eup %1871 }
 0x84f   :  { %v1396_v3 = vadd.f32 1.0, %v1872_v11 }
 0x850   :  { %1873 = vrcp.f32 %v1395_v39 }
 0x85a   :  { %v1874_v2 = vpop.eup %1873 }
 0x85b   :  { %v1403_v40 = vmul.f32 %v1874_v2, %v1402_v48 }
 0x85d   :  { %v1404_v58 = vadd.f32 %v1403_v40, %v2607_v6 }
 0x85f   :  { %1875 = vtanh.f32 %v1404_v58 }
 0x860   :  { %1877 = vrcp.f32 %v1396_v3 }
 0x869   :  { %v1876_v27 = vpop.eup %1875 }
 0x86a   :  { %v1406_v41 = vsub.f32 %v1288_v26, %v1876_v27  ;;  %v1878_v30 = vpop.eup %1877 }
 0x86c   :  { %v1407_v50 = vmul.f32 %v1878_v30, %v1406_v41 }
 0x86e   :  { %v1408_v1 = vadd.f32 %v1876_v27, %v1407_v50 }
 0x870   :  { %1500 = vst [vmem:[%s2590_s5 + $0x38] sm:$0xff] %v1408_v1  ;;  %1418 = vst [vmem:[%s2591_s6] sm:$0xff] %v1408_v1 }

</bundles_post_ra>
